<compile_context>
chip_gen: v7x
topology: tpu7x:2x2x1
jax: 0.10.0
libtpu: 0.0.40
codegen_flags: <defaults>
</compile_context>

<pallas_src>
import functools

import jax
import jax.numpy as jnp
import numpy as np
from jax import lax
from jax.experimental import pallas as pl
from jax.experimental.pallas import tpu as pltpu

_F32 = jnp.float32
_BF16 = jnp.bfloat16

# ---- concrete UpHalf geometry for this Config ----
_CIN = 16            # channels entering the up half (== skip channels)
_C0 = 16             # UpResBlock0 out channels
_C1 = 8              # UpResBlock1 out channels
_COUT = 4            # out_conv out channels (== input_chan)
_TEMB = 16           # time_emblen == max(down_channels)
_H0, _W0 = 8, 8
_H1, _W1 = 16, 16
_HW0 = _H0 * _W0     # 64
_HW1 = _H1 * _W1     # 256
_PADL = 128          # lane-aligned left pad of the shifted-window scratch

# packed-parameter row offsets inside the (88, 16) f32 slab
_R_TW0M, _R_TW0S = 0, 16        # time MLP weights, block 0 (mean / std halves)
_R_TW1M, _R_TW1S = 32, 40       # time MLP weights, block 1
_R_CP0, _R_CP1A, _R_CP1B, _R_CPO = 48, 64, 72, 80
_PP_ROWS = 88


# --------------------------- stride-2 scatter constant ---------------------------

@functools.lru_cache(maxsize=None)
def _scatter_mats_np(H, W, stride):
    """0/1 matrices mapping input pixels to output pixels for each of the 9 taps.

    PyTorch ConvTranspose2d(k=3, padding=1, stride=s, output_padding=s-1):
        out[oy, ox] += W[ci, co, ky, kx] * x[iy, ix],  oy = s*iy + ky - 1,
                                                       ox = s*ix + kx - 1.
    S[t, iy*W+ix, oy*OW+ox] = 1 for valid (oy, ox);  t = ky*3 + kx.
    """
    OH, OW = stride * H, stride * W
    s = np.zeros((9, H * W, OH * OW), np.float32)
    for ky in range(3):
        for kx in range(3):
            t = ky * 3 + kx
            for y in range(H):
                oy = stride * y + ky - 1
                if not (0 <= oy < OH):
                    continue
                for x in range(W):
                    ox = stride * x + kx - 1
                    if 0 <= ox < OW:
                        s[t, y * W + x, oy * OW + ox] = 1.0
    return s


# --------------------------------- in-kernel helpers ---------------------------------

def _silu(x):
    # Exact sigmoid (exp on the EUP + full-precision reciprocal).
    return x * pl.reciprocal(1.0 + jnp.exp(-x), approx=False)


def _gn_silu(x, gamma, beta):
    """GroupNorm(num_groups=C) + SiLU on a (C, HW) slab."""
    mean = jnp.mean(x, axis=1, keepdims=True)
    var = jnp.mean(jnp.square(x - mean), axis=1, keepdims=True)
    y = (x - mean) * lax.rsqrt(var + 1e-5) * gamma + beta
    return _silu(y)


def _shifted_tap_sum(pad_ref, c, h, w):
    """Sum the 9 taps of a stride-1 3x3 transposed conv.

    `pad_ref` is a zero-padded VMEM slab of shape (9*c, _PADL + h*w + w + 2)
    holding the channel-mixed per-tap activations Y[t] in rows [t*c, (t+1)*c)
    and columns [_PADL, _PADL + h*w).  Tap t = (ky, kx) contributes
    Y_t[(oy - sy), (ox - sx)] at output (oy, ox) with sy = ky-1, sx = kx-1;
    out-of-image rows read zeros from the pad, out-of-image columns of the
    sx != 0 taps are masked with an iota lane mask.
    """
    hw = h * w
    lane = lax.broadcasted_iota(jnp.int32, (c, hw), 1)
    ox = lane % w
    acc = pad_ref[4 * c:5 * c, _PADL:_PADL + hw]            # centre tap, no shift
    for ky in range(3):
        for kx in range(3):
            if ky == 1 and kx == 1:
                continue
            t = ky * 3 + kx
            sy, sx = ky - 1, kx - 1
            start = _PADL - (sy * w + sx)                   # static, in [PADL-w-1, PADL+w+1]
            tap = pad_ref[t * c:(t + 1) * c, start:start + hw]
            if sx == 1:
                tap = jnp.where(ox >= 1, tap, 0.0)
            elif sx == -1:
                tap = jnp.where(ox <= w - 2, tap, 0.0)
            acc = acc + tap
    return acc


def _time_scale_shift(h, st, w_mean, w_std, b_mean, b_std):
    """ApplyTimeEmbedding: h * (std + 1) + mean with [mean, std] = Linear(SiLU(t))."""
    mean = jnp.sum(w_mean * st, axis=1, keepdims=True) + b_mean   # (C, 1)
    std = jnp.sum(w_std * st, axis=1, keepdims=True) + b_std
    return h * (std + 1.0) + mean


# ------------------------------------ fused kernel ------------------------------------

def _uphalf_kernel(x_ref, d0_ref, d1_ref, t_ref, s1a_ref, wk_ref, w1b_ref, pp_ref,
                   o_ref, pad0_ref, pad1_ref, *, tb):
    # ---- unpack packed parameters (static slices; constants stay VMEM resident) ----
    tw0m = pp_ref[_R_TW0M:_R_TW0M + _C0, :]      # (16, 16)
    tw0s = pp_ref[_R_TW0S:_R_TW0S + _C0, :]
    tw1m = pp_ref[_R_TW1M:_R_TW1M + _C1, :]      # (8, 16)
    tw1s = pp_ref[_R_TW1S:_R_TW1S + _C1, :]
    cp0 = pp_ref[_R_CP0:_R_CP0 + _C0, :]         # cols: [conv b, gn g, gn b, tb_mean, tb_std]
    cp1a = pp_ref[_R_CP1A:_R_CP1A + _C1, :]
    cp1b = pp_ref[_R_CP1B:_R_CP1B + _C1, :]
    cpo = pp_ref[_R_CPO:_R_CPO + 8, :]           # cols 0:8 = out-conv W (rows 4:8 zero), col 8 = b
    w0 = wk_ref[0:9 * _C0, :]                    # (144, 32) bf16 stacked taps, block 0
    w1a = wk_ref[9 * _C0:9 * _C0 + 9 * _C1, :]   # (72, 32)  bf16 stacked taps, block 1a

    # Zero the shifted-window scratch pads each step (cheap; megacore-safe).
    pad0_ref[...] = jnp.zeros_like(pad0_ref)
    pad1_ref[...] = jnp.zeros_like(pad1_ref)

    for i in range(tb):
        st = _silu(t_ref[i])                                        # (1, 16)

        # ---- UpResBlock 0: UpConv(32->16, s=1) + GN + SiLU + time embedding (8x8) ----
        xcat = jnp.concatenate([x_ref[i], d0_ref[i]], axis=0).astype(_BF16)   # (32, 64)
        y0 = jnp.dot(w0, xcat, preferred_element_type=_F32)                   # (144, 64)
        pad0_ref[:, _PADL:_PADL + _HW0] = y0
        h = _shifted_tap_sum(pad0_ref, _C0, _H0, _W0) + cp0[:, 0:1]           # (16, 64)
        h = _gn_silu(h, cp0[:, 1:2], cp0[:, 2:3])
        h = _time_scale_shift(h, st, tw0m, tw0s, cp0[:, 3:4], cp0[:, 4:5])

        # ---- UpResBlock 1a: UpConv(32->8, s=2), 8x8 -> 16x16, + GN + SiLU ----
        hcat = jnp.concatenate([h, d1_ref[i]], axis=0).astype(_BF16)          # (32, 64)
        y1 = jnp.dot(w1a, hcat, preferred_element_type=_F32)                  # (72, 64)
        acc = jnp.zeros((_C1, _HW1), _F32)
        for t in range(9):                                                    # scatter after
            yt = y1[t * _C1:(t + 1) * _C1, :].astype(_BF16)                   #  channel mixing
            acc = acc + jnp.dot(yt, s1a_ref[t], preferred_element_type=_F32)
        h = acc + cp1a[:, 0:1]                                                # (8, 256)
        h = _gn_silu(h, cp1a[:, 1:2], cp1a[:, 2:3])

        # ---- UpResBlock 1b: UpConv(8->8, s=1) + GN + SiLU + time embedding (16x16) ----
        y2 = jnp.dot(w1b_ref[...], h.astype(_BF16), preferred_element_type=_F32)  # (72, 256)
        pad1_ref[:, _PADL:_PADL + _HW1] = y2
        h = _shifted_tap_sum(pad1_ref, _C1, _H1, _W1) + cp1b[:, 0:1]          # (8, 256)
        h = _gn_silu(h, cp1b[:, 1:2], cp1b[:, 2:3])
        h = _time_scale_shift(h, st, tw1m, tw1s, cp1b[:, 3:4], cp1b[:, 4:5])

        # ---- out_conv: Conv2d(8 -> 4, k=1); rows 4:8 of the padded weight are zero ----
        o = jnp.dot(cpo[:, 0:8].astype(_BF16), h.astype(_BF16),
                    preferred_element_type=_F32) + cpo[:, 8:9]                # (8, 256)
        o_ref[i] = o[0:_COUT, :]                                              # lane-dense store


# ------------------------------------ host wrapper ------------------------------------

def _stacked_taps(w_ct):
    """(Cin, Cout, 3, 3) ConvTranspose2d weight -> (9*Cout, Cin) bf16, row = t*Cout + co."""
    cin, cout = w_ct.shape[0], w_ct.shape[1]
    return jnp.transpose(w_ct, (2, 3, 1, 0)).reshape(9 * cout, cin).astype(_BF16)


def _pack_params(params):
    """Pack all small parameters into two slabs: wk (216,32) bf16 and pp (88,16) f32."""
    def col(v):
        return jnp.asarray(v, _F32).reshape(-1, 1)

    wk = jnp.concatenate([_stacked_taps(params['b0']['w_ct']),      # (144, 32)
                          _stacked_taps(params['b1a']['w_ct'])],    # (72, 32)
                         axis=0)                                     # (216, 32) bf16
    w1b = _stacked_taps(params['b1b']['w_ct'])                       # (72, 8) bf16

    tw0 = jnp.asarray(params['b0']['t_w'], _F32)     # (temb, 2*C0) = (16, 32)
    tb0 = jnp.asarray(params['b0']['t_b'], _F32)     # (32,)
    tw1 = jnp.asarray(params['b1t']['t_w'], _F32)    # (16, 16)
    tb1 = jnp.asarray(params['b1t']['t_b'], _F32)    # (16,)

    cp0 = jnp.concatenate([col(params['b0']['b_ct']), col(params['b0']['gn_w']),
                           col(params['b0']['gn_b']), col(tb0[:_C0]), col(tb0[_C0:]),
                           jnp.zeros((_C0, 11), _F32)], axis=1)                 # (16, 16)
    cp1a = jnp.concatenate([col(params['b1a']['b_ct']), col(params['b1a']['gn_w']),
                            col(params['b1a']['gn_b']),
                            jnp.zeros((_C1, 13), _F32)], axis=1)                # (8, 16)
    cp1b = jnp.concatenate([col(params['b1b']['b_ct']), col(params['b1b']['gn_w']),
                            col(params['b1b']['gn_b']), col(tb1[:_C1]), col(tb1[_C1:]),
                            jnp.zeros((_C1, 11), _F32)], axis=1)                # (8, 16)
    wout = jnp.asarray(params['out']['w'], _F32).reshape(_COUT, _C1)            # (4, 8)
    bout = col(params['out']['b'])                                              # (4, 1)
    cpo = jnp.concatenate([jnp.concatenate([wout, bout, jnp.zeros((_COUT, 7), _F32)], axis=1),
                           jnp.zeros((8 - _COUT, 16), _F32)], axis=0)           # (8, 16)

    pp = jnp.concatenate([tw0[:, :_C0].T, tw0[:, _C0:].T,     # mean / std time weights, block 0
                          tw1[:, :_C1].T, tw1[:, _C1:].T,     # mean / std time weights, block 1
                          cp0, cp1a, cp1b, cpo], axis=0)      # (88, 16) f32
    assert pp.shape == (_PP_ROWS, _TEMB)
    return wk, w1b, pp


def up_half_forward(params, inputs, down_outputs, time_embed, *, batch_tile=1):
    """UpHalf forward.  batch_tile>1 amortizes grid-step overhead on single-TC
    v5e/v6e; the default 1 keeps one batch per grid step so v7x's two
    TensorCores can each take half the batch (dimension_semantics='parallel')."""
    B, cin, H, W = inputs.shape
    assert (cin, H, W) == (_CIN, _H0, _W0), (cin, H, W)
    assert time_embed.shape == (B, _TEMB)
    assert B % batch_tile == 0

    downs = list(down_outputs)
    d0 = downs.pop()                      # skip for UpResBlock 0
    d1 = downs.pop()                      # skip for UpResBlock 1

    # (B, C, H*W) slabs -- trivial reshapes, no host-side concat / transpose.
    x = inputs.reshape(B, _CIN, _HW0).astype(_F32)
    d0 = d0.reshape(B, _CIN, _HW0).astype(_F32)
    d1 = d1.reshape(B, _CIN, _HW0).astype(_F32)
    t = time_embed.reshape(B, 1, _TEMB).astype(_F32)

    # Constant 0/1 scatter for the single stride-2 conv (bf16 is exact for 0/1).
    s1a = jnp.asarray(_scatter_mats_np(_H0, _W0, 2), _BF16)        # (9, 64, 256)
    wk, w1b, pp = _pack_params(params)

    kernel = functools.partial(_uphalf_kernel, tb=batch_tile)
    out = pl.pallas_call(
        kernel,
        out_shape=jax.ShapeDtypeStruct((B, _COUT, _HW1), jnp.float32),
        grid=(B // batch_tile,),
        in_specs=[
            pl.BlockSpec((batch_tile, _CIN, _HW0), lambda b: (b, 0, 0)),   # inputs
            pl.BlockSpec((batch_tile, _CIN, _HW0), lambda b: (b, 0, 0)),   # skip 0
            pl.BlockSpec((batch_tile, _CIN, _HW0), lambda b: (b, 0, 0)),   # skip 1
            pl.BlockSpec((batch_tile, 1, _TEMB), lambda b: (b, 0, 0)),     # time embedding
            pl.BlockSpec(s1a.shape, lambda b: (0, 0, 0)),                  # stride-2 scatter
            pl.BlockSpec(wk.shape, lambda b: (0, 0)),                      # stacked conv weights
            pl.BlockSpec(w1b.shape, lambda b: (0, 0)),                     # block-1b conv weight
            pl.BlockSpec(pp.shape, lambda b: (0, 0)),                      # packed small params
        ],
        out_specs=pl.BlockSpec((batch_tile, _COUT, _HW1), lambda b: (b, 0, 0)),
        scratch_shapes=[
            pltpu.VMEM((9 * _C0, _PADL + _HW0 + _W0 + 2), jnp.float32),    # shifted-window pad, 8x8
            pltpu.VMEM((9 * _C1, _PADL + _HW1 + _W1 + 2), jnp.float32),    # shifted-window pad, 16x16
        ],
        compiler_params=pltpu.CompilerParams(dimension_semantics=("parallel",)),
    )(x, d0, d1, t, s1a, wk, w1b, pp)

    return out.reshape(B, _COUT, _H1, _W1)


# ------------------------------ pure-JAX reference ------------------------------

def _ref_conv_transpose3x3(x, w_ct, bias, stride):
    w_conv = jnp.transpose(w_ct[:, :, ::-1, ::-1], (1, 0, 2, 3))  # (Cout, Cin, 3, 3)
    if stride == 1:
        pad, dil = ((1, 1), (1, 1)), (1, 1)
    else:
        pad, dil = ((1, 2), (1, 2)), (2, 2)
    out = lax.conv_general_dilated(x, w_conv, (1, 1), pad, lhs_dilation=dil,
                                   dimension_numbers=('NCHW', 'OIHW', 'NCHW'),
                                   precision=lax.Precision.HIGHEST)
    return out + bias[None, :, None, None]


def _ref_gn_silu(x, gamma, beta):
    mean = x.mean(axis=(2, 3), keepdims=True)
    var = ((x - mean) ** 2).mean(axis=(2, 3), keepdims=True)
    y = (x - mean) * lax.rsqrt(var + 1e-5)
    y = y * gamma[None, :, None, None] + beta[None, :, None, None]
    return y * jax.nn.sigmoid(y)


def _ref_apply_time(x, t, w, b):
    ms = jnp.matmul(jax.nn.silu(t), w, precision=lax.Precision.HIGHEST) + b
    C = x.shape[1]
    mean = ms[:, :C][:, :, None, None]
    std = ms[:, C:][:, :, None, None]
    return x * (std + 1.0) + mean


def ref_forward(params, inputs, down_outputs, t):
    downs = list(down_outputs)
    out = inputs
    d = downs.pop()
    out = jnp.concatenate([out, d], axis=1)
    out = _ref_conv_transpose3x3(out, params['b0']['w_ct'], params['b0']['b_ct'], 1)
    out = _ref_gn_silu(out, params['b0']['gn_w'], params['b0']['gn_b'])
    out = _ref_apply_time(out, t, params['b0']['t_w'], params['b0']['t_b'])
    d = downs.pop()
    out = jnp.concatenate([out, d], axis=1)
    out = _ref_conv_transpose3x3(out, params['b1a']['w_ct'], params['b1a']['b_ct'], 2)
    out = _ref_gn_silu(out, params['b1a']['gn_w'], params['b1a']['gn_b'])
    out = _ref_conv_transpose3x3(out, params['b1b']['w_ct'], params['b1b']['b_ct'], 1)
    out = _ref_gn_silu(out, params['b1b']['gn_w'], params['b1b']['gn_b'])
    out = _ref_apply_time(out, t, params['b1t']['t_w'], params['b1t']['t_b'])
    B, C, H, W = out.shape
    xr = jnp.transpose(out, (0, 2, 3, 1)).reshape(B * H * W, C)
    y = jnp.matmul(xr, params['out']['w'].reshape(-1, C).T,
                   precision=lax.Precision.HIGHEST) + params['out']['b']
    return y.reshape(B, H, W, -1).transpose(0, 3, 1, 2)


# ------------------------------------ params ------------------------------------

def init_params(key):
    def nrm(k, shape, scale=0.1):
        return scale * jax.random.normal(k, shape, jnp.float32)

    ks = jax.random.split(key, 18)
    return {
        'b0': {'w_ct': nrm(ks[0], (32, 16, 3, 3)), 'b_ct': nrm(ks[1], (16,)),
               'gn_w': 1.0 + nrm(ks[2], (16,)), 'gn_b': nrm(ks[3], (16,)),
               't_w': nrm(ks[4], (16, 32)), 't_b': nrm(ks[5], (32,))},
        'b1a': {'w_ct': nrm(ks[6], (32, 8, 3, 3)), 'b_ct': nrm(ks[7], (8,)),
                'gn_w': 1.0 + nrm(ks[8], (8,)), 'gn_b': nrm(ks[9], (8,))},
        'b1b': {'w_ct': nrm(ks[10], (8, 8, 3, 3)), 'b_ct': nrm(ks[11], (8,)),
                'gn_w': 1.0 + nrm(ks[12], (8,)), 'gn_b': nrm(ks[13], (8,))},
        'b1t': {'t_w': nrm(ks[14], (16, 16)), 't_b': nrm(ks[15], (16,))},
        'out': {'w': nrm(ks[16], (4, 8, 1, 1)), 'b': nrm(ks[17], (4,))},
    }


if __name__ == "__main__":
    key = jax.random.PRNGKey(0)
    kp, k1, k2, k3, k4 = jax.random.split(key, 5)
    params = init_params(kp)

    B, Cin, H, W = 2, 16, 8, 8            # up-half starts at 8x8, ends at 16x16
    inputs = jax.random.normal(k1, (B, Cin, H, W), jnp.float32)
    down_outputs = [jax.random.normal(k2, (B, 16, H, W), jnp.float32),   # popped 2nd
                    jax.random.normal(k3, (B, 16, H, W), jnp.float32)]   # popped 1st
    time_embed = jax.random.normal(k4, (B, 16), jnp.float32)             # time_emblen=16

    out = jax.jit(up_half_forward)(params, inputs, down_outputs, time_embed)
    out = jax.block_until_ready(out)
    assert out.shape == (B, 4, 2 * H, 2 * W), out.shape

    ref = ref_forward(params, inputs, down_outputs, time_embed)
    np.testing.assert_allclose(np.asarray(out), np.asarray(ref), rtol=5e-2, atol=5e-2)
    print("KERNEL_OK")
</pallas_src>

<mosaic_0001>
module attributes {stable_mosaic.version = 11 : i64} {
  func.func @_uphalf_kernel(%arg0: i32, %arg1: memref<1x16x64xf32, #tpu.memory_space<vmem>>, %arg2: memref<1x16x64xf32, #tpu.memory_space<vmem>>, %arg3: memref<1x16x64xf32, #tpu.memory_space<vmem>>, %arg4: memref<1x1x16xf32, #tpu.memory_space<vmem>>, %arg5: memref<9x64x256xbf16, #tpu.memory_space<vmem>>, %arg6: memref<216x32xbf16, #tpu.memory_space<vmem>>, %arg7: memref<72x8xbf16, #tpu.memory_space<vmem>>, %arg8: memref<88x16xf32, #tpu.memory_space<vmem>>, %arg9: memref<1x4x256xf32, #tpu.memory_space<vmem>>, %arg10: memref<144x202xf32, #tpu.memory_space<vmem>>, %arg11: memref<72x402xf32, #tpu.memory_space<vmem>>) attributes {dimension_semantics = [#tpu.dimension_semantics<parallel>], iteration_bounds = array<i64: 2>, scalar_prefetch = 0 : i64, scratch_operands = 2 : i64, tpu.core_type = #tpu.core_type<tc>, window_params = [{transform_indices = @transform_0, window_bounds = array<i64: 1, 16, 64>}, {transform_indices = @transform_1, window_bounds = array<i64: 1, 16, 64>}, {transform_indices = @transform_2, window_bounds = array<i64: 1, 16, 64>}, {transform_indices = @transform_3, window_bounds = array<i64: 1, 1, 16>}, {pipeline_mode = #tpu.pipeline_mode<synchronous>, transform_indices = @transform_4, window_bounds = array<i64: 9, 64, 256>}, {pipeline_mode = #tpu.pipeline_mode<synchronous>, transform_indices = @transform_5, window_bounds = array<i64: 216, 32>}, {pipeline_mode = #tpu.pipeline_mode<synchronous>, transform_indices = @transform_6, window_bounds = array<i64: 72, 8>}, {pipeline_mode = #tpu.pipeline_mode<synchronous>, transform_indices = @transform_7, window_bounds = array<i64: 88, 16>}, {transform_indices = @transform_8, window_bounds = array<i64: 1, 4, 256>}]} {
    %c0 = arith.constant 0 : index
    %c0_0 = arith.constant 0 : index
    %0 = vector.load %arg8[%c0, %c0_0] : memref<88x16xf32, #tpu.memory_space<vmem>>, vector<16x16xf32>
    %c16 = arith.constant 16 : index
    %c0_1 = arith.constant 0 : index
    %1 = vector.load %arg8[%c16, %c0_1] : memref<88x16xf32, #tpu.memory_space<vmem>>, vector<16x16xf32>
    %c32 = arith.constant 32 : index
    %c0_2 = arith.constant 0 : index
    %2 = vector.load %arg8[%c32, %c0_2] : memref<88x16xf32, #tpu.memory_space<vmem>>, vector<8x16xf32>
    %c40 = arith.constant 40 : index
    %c0_3 = arith.constant 0 : index
    %3 = vector.load %arg8[%c40, %c0_3] : memref<88x16xf32, #tpu.memory_space<vmem>>, vector<8x16xf32>
    %c48 = arith.constant 48 : index
    %c0_4 = arith.constant 0 : index
    %4 = vector.load %arg8[%c48, %c0_4] : memref<88x16xf32, #tpu.memory_space<vmem>>, vector<16x16xf32>
    %c64 = arith.constant 64 : index
    %c0_5 = arith.constant 0 : index
    %5 = vector.load %arg8[%c64, %c0_5] : memref<88x16xf32, #tpu.memory_space<vmem>>, vector<8x16xf32>
    %c72 = arith.constant 72 : index
    %c0_6 = arith.constant 0 : index
    %6 = vector.load %arg8[%c72, %c0_6] : memref<88x16xf32, #tpu.memory_space<vmem>>, vector<8x16xf32>
    %c80 = arith.constant 80 : index
    %c0_7 = arith.constant 0 : index
    %7 = vector.load %arg8[%c80, %c0_7] : memref<88x16xf32, #tpu.memory_space<vmem>>, vector<8x16xf32>
    %c0_8 = arith.constant 0 : index
    %c0_9 = arith.constant 0 : index
    %8 = vector.load %arg6[%c0_8, %c0_9] : memref<216x32xbf16, #tpu.memory_space<vmem>>, vector<144x32xbf16>
    %c144 = arith.constant 144 : index
    %c0_10 = arith.constant 0 : index
    %9 = vector.load %arg6[%c144, %c0_10] : memref<216x32xbf16, #tpu.memory_space<vmem>>, vector<72x32xbf16>
    %cst = arith.constant 0.000000e+00 : f32
    %10 = vector.broadcast %cst : f32 to vector<144x202xf32>
    %c0_11 = arith.constant 0 : index
    %c0_12 = arith.constant 0 : index
    %11 = vector.load %arg10[%c0_11, %c0_12] : memref<144x202xf32, #tpu.memory_space<vmem>>, vector<144x202xf32>
    tpu.vector_store %arg10[%c0_11, %c0_12], %10 {strides = array<i32>} : memref<144x202xf32, #tpu.memory_space<vmem>>, vector<144x202xf32>,
    %cst_13 = arith.constant 0.000000e+00 : f32
    %12 = vector.broadcast %cst_13 : f32 to vector<72x402xf32>
    %c0_14 = arith.constant 0 : index
    %c0_15 = arith.constant 0 : index
    %13 = vector.load %arg11[%c0_14, %c0_15] : memref<72x402xf32, #tpu.memory_space<vmem>>, vector<72x402xf32>
    tpu.vector_store %arg11[%c0_14, %c0_15], %12 {strides = array<i32>} : memref<72x402xf32, #tpu.memory_space<vmem>>, vector<72x402xf32>,
    %c0_16 = arith.constant 0 : index
    %c0_17 = arith.constant 0 : index
    %c0_18 = arith.constant 0 : index
    %14 = vector.load %arg4[%c0_16, %c0_17, %c0_18] : memref<1x1x16xf32, #tpu.memory_space<vmem>>, vector<1x1x16xf32>
    %15 = vector.shape_cast %14 : vector<1x1x16xf32> to vector<1x16xf32>
    %cst_19 = arith.constant 0.000000e+00 : f32
    %16 = vector.broadcast %cst_19 : f32 to vector<1x16xf32>
    %17 = arith.subf %16, %15 : vector<1x16xf32>
    %18 = math.exp %17 : vector<1x16xf32>
    %cst_20 = arith.constant 1.000000e+00 : f32
    %19 = vector.broadcast %cst_20 : f32 to vector<1x16xf32>
    %20 = arith.addf %19, %18 : vector<1x16xf32>
    %21 = tpu.reciprocal %20 : vector<1x16xf32> -> vector<1x16xf32>
    %22 = arith.mulf %15, %21 : vector<1x16xf32>
    %c0_21 = arith.constant 0 : index
    %c0_22 = arith.constant 0 : index
    %c0_23 = arith.constant 0 : index
    %23 = vector.load %arg1[%c0_21, %c0_22, %c0_23] : memref<1x16x64xf32, #tpu.memory_space<vmem>>, vector<1x16x64xf32>
    %24 = vector.shape_cast %23 : vector<1x16x64xf32> to vector<16x64xf32>
    %c0_24 = arith.constant 0 : index
    %c0_25 = arith.constant 0 : index
    %c0_26 = arith.constant 0 : index
    %25 = vector.load %arg2[%c0_24, %c0_25, %c0_26] : memref<1x16x64xf32, #tpu.memory_space<vmem>>, vector<1x16x64xf32>
    %26 = vector.shape_cast %25 : vector<1x16x64xf32> to vector<16x64xf32>
    %27 = tpu.concatenate %24, %26 in 0 : vector<16x64xf32>, vector<16x64xf32> -> vector<32x64xf32>
    %28 = arith.truncf %27 : vector<32x64xf32> to vector<32x64xbf16>
    %cst_27 = arith.constant dense<0.000000e+00> : vector<144x64xf32>
    %29 = tpu.matmul %8, %28, %cst_27 {dimension_numbers = #tpu.dot_dimension_numbers<[1], [0], [0], [1], [0, 0, 1, 1], [], []>} : vector<144x32xbf16>, vector<32x64xbf16>, vector<144x64xf32> -> vector<144x64xf32>
    %c0_28 = arith.constant 0 : index
    %c128 = arith.constant 128 : index
    %30 = vector.load %arg10[%c0_28, %c128] : memref<144x202xf32, #tpu.memory_space<vmem>>, vector<144x64xf32>
    tpu.vector_store %arg10[%c0_28, %c128], %29 {strides = array<i32>} : memref<144x202xf32, #tpu.memory_space<vmem>>, vector<144x64xf32>,
    %31 = tpu.iota {dimensions = array<i32: 1>} : vector<16x64xi32>
    %c8_i32 = arith.constant 8 : i32
    %c0_i32 = arith.constant 0 : i32
    %32 = arith.cmpi eq, %c8_i32, %c0_i32 : i32
    %c1_i32 = arith.constant 1 : i32
    %33 = arith.select %32, %c1_i32, %c8_i32 : i32
    %34 = vector.broadcast %33 : i32 to vector<16x64xi32>
    %35 = arith.remsi %31, %34 : vector<16x64xi32>
    %c0_i32_29 = arith.constant 0 : i32
    %36 = vector.broadcast %c0_i32_29 : i32 to vector<16x64xi32>
    %37 = arith.cmpi ne, %35, %36 : vector<16x64xi32>
    %c0_i32_30 = arith.constant 0 : i32
    %38 = vector.broadcast %c0_i32_30 : i32 to vector<16x64xi32>
    %39 = arith.cmpi slt, %35, %38 : vector<16x64xi32>
    %c0_i32_31 = arith.constant 0 : i32
    %40 = arith.cmpi slt, %33, %c0_i32_31 : i32
    %41 = vector.broadcast %40 : i1 to vector<16x64xi1>
    %42 = vector.broadcast %41 : vector<16x64xi1> to vector<16x64xi1>
    %43 = arith.xori %39, %42 : vector<16x64xi1>
    %44 = arith.andi %43, %37 : vector<16x64xi1>
    %45 = vector.broadcast %33 : i32 to vector<16x64xi32>
    %46 = arith.addi %35, %45 : vector<16x64xi32>
    %47 = arith.select %44, %46, %35 : vector<16x64xi1>, vector<16x64xi32>
    %c64_32 = arith.constant 64 : index
    %c128_33 = arith.constant 128 : index
    %48 = vector.load %arg10[%c64_32, %c128_33] : memref<144x202xf32, #tpu.memory_space<vmem>>, vector<16x64xf32>
    %c0_34 = arith.constant 0 : index
    %c137 = arith.constant 137 : index
    %49 = vector.load %arg10[%c0_34, %c137] : memref<144x202xf32, #tpu.memory_space<vmem>>, vector<16x64xf32>
    %c6_i32 = arith.constant 6 : i32
    %50 = vector.broadcast %c6_i32 : i32 to vector<16x64xi32>
    %51 = arith.cmpi sle, %47, %50 : vector<16x64xi32>
    %cst_35 = arith.constant 0.000000e+00 : f32
    %52 = vector.broadcast %cst_35 : f32 to vector<16x64xf32>
    %53 = arith.select %51, %49, %52 : vector<16x64xi1>, vector<16x64xf32>
    %54 = arith.addf %48, %53 : vector<16x64xf32>
    %c16_36 = arith.constant 16 : index
    %c136 = arith.constant 136 : index
    %55 = vector.load %arg10[%c16_36, %c136] : memref<144x202xf32, #tpu.memory_space<vmem>>, vector<16x64xf32>
    %56 = arith.addf %54, %55 : vector<16x64xf32>
    %c32_37 = arith.constant 32 : index
    %c135 = arith.constant 135 : index
    %57 = vector.load %arg10[%c32_37, %c135] : memref<144x202xf32, #tpu.memory_space<vmem>>, vector<16x64xf32>
    %c1_i32_38 = arith.constant 1 : i32
    %58 = vector.broadcast %c1_i32_38 : i32 to vector<16x64xi32>
    %59 = arith.cmpi sge, %47, %58 : vector<16x64xi32>
    %cst_39 = arith.constant 0.000000e+00 : f32
    %60 = vector.broadcast %cst_39 : f32 to vector<16x64xf32>
    %61 = arith.select %59, %57, %60 : vector<16x64xi1>, vector<16x64xf32>
    %62 = arith.addf %56, %61 : vector<16x64xf32>
    %c48_40 = arith.constant 48 : index
    %c129 = arith.constant 129 : index
    %63 = vector.load %arg10[%c48_40, %c129] : memref<144x202xf32, #tpu.memory_space<vmem>>, vector<16x64xf32>
    %c6_i32_41 = arith.constant 6 : i32
    %64 = vector.broadcast %c6_i32_41 : i32 to vector<16x64xi32>
    %65 = arith.cmpi sle, %47, %64 : vector<16x64xi32>
    %cst_42 = arith.constant 0.000000e+00 : f32
    %66 = vector.broadcast %cst_42 : f32 to vector<16x64xf32>
    %67 = arith.select %65, %63, %66 : vector<16x64xi1>, vector<16x64xf32>
    %68 = arith.addf %62, %67 : vector<16x64xf32>
    %c80_43 = arith.constant 80 : index
    %c127 = arith.constant 127 : index
    %69 = vector.load %arg10[%c80_43, %c127] : memref<144x202xf32, #tpu.memory_space<vmem>>, vector<16x64xf32>
    %c1_i32_44 = arith.constant 1 : i32
    %70 = vector.broadcast %c1_i32_44 : i32 to vector<16x64xi32>
    %71 = arith.cmpi sge, %47, %70 : vector<16x64xi32>
    %cst_45 = arith.constant 0.000000e+00 : f32
    %72 = vector.broadcast %cst_45 : f32 to vector<16x64xf32>
    %73 = arith.select %71, %69, %72 : vector<16x64xi1>, vector<16x64xf32>
    %74 = arith.addf %68, %73 : vector<16x64xf32>
    %c96 = arith.constant 96 : index
    %c121 = arith.constant 121 : index
    %75 = vector.load %arg10[%c96, %c121] : memref<144x202xf32, #tpu.memory_space<vmem>>, vector<16x64xf32>
    %c6_i32_46 = arith.constant 6 : i32
    %76 = vector.broadcast %c6_i32_46 : i32 to vector<16x64xi32>
    %77 = arith.cmpi sle, %47, %76 : vector<16x64xi32>
    %cst_47 = arith.constant 0.000000e+00 : f32
    %78 = vector.broadcast %cst_47 : f32 to vector<16x64xf32>
    %79 = arith.select %77, %75, %78 : vector<16x64xi1>, vector<16x64xf32>
    %80 = arith.addf %74, %79 : vector<16x64xf32>
    %c112 = arith.constant 112 : index
    %c120 = arith.constant 120 : index
    %81 = vector.load %arg10[%c112, %c120] : memref<144x202xf32, #tpu.memory_space<vmem>>, vector<16x64xf32>
    %82 = arith.addf %80, %81 : vector<16x64xf32>
    %c128_48 = arith.constant 128 : index
    %c119 = arith.constant 119 : index
    %83 = vector.load %arg10[%c128_48, %c119] : memref<144x202xf32, #tpu.memory_space<vmem>>, vector<16x64xf32>
    %c1_i32_49 = arith.constant 1 : i32
    %84 = vector.broadcast %c1_i32_49 : i32 to vector<16x64xi32>
    %85 = arith.cmpi sge, %47, %84 : vector<16x64xi32>
    %cst_50 = arith.constant 0.000000e+00 : f32
    %86 = vector.broadcast %cst_50 : f32 to vector<16x64xf32>
    %87 = arith.select %85, %83, %86 : vector<16x64xi1>, vector<16x64xf32>
    %88 = arith.addf %82, %87 : vector<16x64xf32>
    %89 = vector.extract_strided_slice %4 {offsets = [0, 0], sizes = [16, 1], strides = [1, 1]} : vector<16x16xf32> to vector<16x1xf32>
    %90 = vector.broadcast %89 : vector<16x1xf32> to vector<16x64xf32>
    %91 = arith.addf %88, %90 : vector<16x64xf32>
    %92 = vector.extract_strided_slice %4 {offsets = [0, 1], sizes = [16, 1], strides = [1, 1]} : vector<16x16xf32> to vector<16x1xf32>
    %93 = vector.extract_strided_slice %4 {offsets = [0, 2], sizes = [16, 1], strides = [1, 1]} : vector<16x16xf32> to vector<16x1xf32>
    %cst_51 = arith.constant dense<0.000000e+00> : vector<16xf32>
    %94 = vector.multi_reduction <add>, %91, %cst_51 [1] : vector<16x64xf32> to vector<16xf32>
    %95 = vector.shape_cast %94 : vector<16xf32> to vector<16x1xf32>
    %cst_52 = arith.constant 6.400000e+01 : f32
    %96 = vector.broadcast %cst_52 : f32 to vector<16x1xf32>
    %97 = arith.divf %95, %96 : vector<16x1xf32>
    %98 = vector.broadcast %97 : vector<16x1xf32> to vector<16x64xf32>
    %99 = arith.subf %91, %98 : vector<16x64xf32>
    %100 = arith.mulf %99, %99 : vector<16x64xf32>
    %cst_53 = arith.constant dense<0.000000e+00> : vector<16xf32>
    %101 = vector.multi_reduction <add>, %100, %cst_53 [1] : vector<16x64xf32> to vector<16xf32>
    %102 = vector.shape_cast %101 : vector<16xf32> to vector<16x1xf32>
    %cst_54 = arith.constant 6.400000e+01 : f32
    %103 = vector.broadcast %cst_54 : f32 to vector<16x1xf32>
    %104 = arith.divf %102, %103 : vector<16x1xf32>
    %105 = vector.broadcast %97 : vector<16x1xf32> to vector<16x64xf32>
    %106 = arith.subf %91, %105 : vector<16x64xf32>
    %cst_55 = arith.constant 9.99999974E-6 : f32
    %107 = vector.broadcast %cst_55 : f32 to vector<16x1xf32>
    %108 = arith.addf %104, %107 : vector<16x1xf32>
    %109 = math.rsqrt %108 : vector<16x1xf32>
    %110 = vector.broadcast %109 : vector<16x1xf32> to vector<16x64xf32>
    %111 = arith.mulf %106, %110 : vector<16x64xf32>
    %112 = vector.broadcast %92 : vector<16x1xf32> to vector<16x64xf32>
    %113 = arith.mulf %111, %112 : vector<16x64xf32>
    %114 = vector.broadcast %93 : vector<16x1xf32> to vector<16x64xf32>
    %115 = arith.addf %113, %114 : vector<16x64xf32>
    %cst_56 = arith.constant 0.000000e+00 : f32
    %116 = vector.broadcast %cst_56 : f32 to vector<16x64xf32>
    %117 = arith.subf %116, %115 : vector<16x64xf32>
    %118 = math.exp %117 : vector<16x64xf32>
    %cst_57 = arith.constant 1.000000e+00 : f32
    %119 = vector.broadcast %cst_57 : f32 to vector<16x64xf32>
    %120 = arith.addf %119, %118 : vector<16x64xf32>
    %121 = tpu.reciprocal %120 : vector<16x64xf32> -> vector<16x64xf32>
    %122 = arith.mulf %115, %121 : vector<16x64xf32>
    %123 = vector.extract_strided_slice %4 {offsets = [0, 3], sizes = [16, 1], strides = [1, 1]} : vector<16x16xf32> to vector<16x1xf32>
    %124 = vector.extract_strided_slice %4 {offsets = [0, 4], sizes = [16, 1], strides = [1, 1]} : vector<16x16xf32> to vector<16x1xf32>
    %125 = vector.broadcast %22 : vector<1x16xf32> to vector<16x16xf32>
    %126 = arith.mulf %0, %125 : vector<16x16xf32>
    %cst_58 = arith.constant dense<0.000000e+00> : vector<16xf32>
    %127 = vector.multi_reduction <add>, %126, %cst_58 [1] : vector<16x16xf32> to vector<16xf32>
    %128 = vector.shape_cast %127 : vector<16xf32> to vector<16x1xf32>
    %129 = arith.addf %128, %123 : vector<16x1xf32>
    %130 = vector.broadcast %22 : vector<1x16xf32> to vector<16x16xf32>
    %131 = arith.mulf %1, %130 : vector<16x16xf32>
    %cst_59 = arith.constant dense<0.000000e+00> : vector<16xf32>
    %132 = vector.multi_reduction <add>, %131, %cst_59 [1] : vector<16x16xf32> to vector<16xf32>
    %133 = vector.shape_cast %132 : vector<16xf32> to vector<16x1xf32>
    %134 = arith.addf %133, %124 : vector<16x1xf32>
    %cst_60 = arith.constant 1.000000e+00 : f32
    %135 = vector.broadcast %cst_60 : f32 to vector<16x1xf32>
    %136 = arith.addf %134, %135 : vector<16x1xf32>
    %137 = vector.broadcast %136 : vector<16x1xf32> to vector<16x64xf32>
    %138 = arith.mulf %122, %137 : vector<16x64xf32>
    %139 = vector.broadcast %129 : vector<16x1xf32> to vector<16x64xf32>
    %140 = arith.addf %138, %139 : vector<16x64xf32>
    %c0_61 = arith.constant 0 : index
    %c0_62 = arith.constant 0 : index
    %c0_63 = arith.constant 0 : index
    %141 = vector.load %arg3[%c0_61, %c0_62, %c0_63] : memref<1x16x64xf32, #tpu.memory_space<vmem>>, vector<1x16x64xf32>
    %142 = vector.shape_cast %141 : vector<1x16x64xf32> to vector<16x64xf32>
    %143 = tpu.concatenate %140, %142 in 0 : vector<16x64xf32>, vector<16x64xf32> -> vector<32x64xf32>
    %144 = arith.truncf %143 : vector<32x64xf32> to vector<32x64xbf16>
    %cst_64 = arith.constant dense<0.000000e+00> : vector<72x64xf32>
    %145 = tpu.matmul %9, %144, %cst_64 {dimension_numbers = #tpu.dot_dimension_numbers<[1], [0], [0], [1], [0, 0, 1, 1], [], []>} : vector<72x32xbf16>, vector<32x64xbf16>, vector<72x64xf32> -> vector<72x64xf32>
    %cst_65 = arith.constant 0.000000e+00 : f32
    %146 = vector.broadcast %cst_65 : f32 to vector<8x256xf32>
    %147 = vector.extract_strided_slice %145 {offsets = [0, 0], sizes = [8, 64], strides = [1, 1]} : vector<72x64xf32> to vector<8x64xf32>
    %148 = arith.truncf %147 : vector<8x64xf32> to vector<8x64xbf16>
    %c0_66 = arith.constant 0 : index
    %c0_67 = arith.constant 0 : index
    %c0_68 = arith.constant 0 : index
    %149 = vector.load %arg5[%c0_66, %c0_67, %c0_68] : memref<9x64x256xbf16, #tpu.memory_space<vmem>>, vector<1x64x256xbf16>
    %150 = vector.shape_cast %149 : vector<1x64x256xbf16> to vector<64x256xbf16>
    %cst_69 = arith.constant dense<0.000000e+00> : vector<8x256xf32>
    %151 = tpu.matmul %148, %150, %cst_69 {dimension_numbers = #tpu.dot_dimension_numbers<[1], [0], [0], [1], [0, 0, 1, 1], [], []>} : vector<8x64xbf16>, vector<64x256xbf16>, vector<8x256xf32> -> vector<8x256xf32>
    %152 = arith.addf %146, %151 : vector<8x256xf32>
    %153 = vector.extract_strided_slice %145 {offsets = [8, 0], sizes = [8, 64], strides = [1, 1]} : vector<72x64xf32> to vector<8x64xf32>
    %154 = arith.truncf %153 : vector<8x64xf32> to vector<8x64xbf16>
    %c1 = arith.constant 1 : index
    %c0_70 = arith.constant 0 : index
    %c0_71 = arith.constant 0 : index
    %155 = vector.load %arg5[%c1, %c0_70, %c0_71] : memref<9x64x256xbf16, #tpu.memory_space<vmem>>, vector<1x64x256xbf16>
    %156 = vector.shape_cast %155 : vector<1x64x256xbf16> to vector<64x256xbf16>
    %cst_72 = arith.constant dense<0.000000e+00> : vector<8x256xf32>
    %157 = tpu.matmul %154, %156, %cst_72 {dimension_numbers = #tpu.dot_dimension_numbers<[1], [0], [0], [1], [0, 0, 1, 1], [], []>} : vector<8x64xbf16>, vector<64x256xbf16>, vector<8x256xf32> -> vector<8x256xf32>
    %158 = arith.addf %152, %157 : vector<8x256xf32>
    %159 = vector.extract_strided_slice %145 {offsets = [16, 0], sizes = [8, 64], strides = [1, 1]} : vector<72x64xf32> to vector<8x64xf32>
    %160 = arith.truncf %159 : vector<8x64xf32> to vector<8x64xbf16>
    %c2 = arith.constant 2 : index
    %c0_73 = arith.constant 0 : index
    %c0_74 = arith.constant 0 : index
    %161 = vector.load %arg5[%c2, %c0_73, %c0_74] : memref<9x64x256xbf16, #tpu.memory_space<vmem>>, vector<1x64x256xbf16>
    %162 = vector.shape_cast %161 : vector<1x64x256xbf16> to vector<64x256xbf16>
    %cst_75 = arith.constant dense<0.000000e+00> : vector<8x256xf32>
    %163 = tpu.matmul %160, %162, %cst_75 {dimension_numbers = #tpu.dot_dimension_numbers<[1], [0], [0], [1], [0, 0, 1, 1], [], []>} : vector<8x64xbf16>, vector<64x256xbf16>, vector<8x256xf32> -> vector<8x256xf32>
    %164 = arith.addf %158, %163 : vector<8x256xf32>
    %165 = vector.extract_strided_slice %145 {offsets = [24, 0], sizes = [8, 64], strides = [1, 1]} : vector<72x64xf32> to vector<8x64xf32>
    %166 = arith.truncf %165 : vector<8x64xf32> to vector<8x64xbf16>
    %c3 = arith.constant 3 : index
    %c0_76 = arith.constant 0 : index
    %c0_77 = arith.constant 0 : index
    %167 = vector.load %arg5[%c3, %c0_76, %c0_77] : memref<9x64x256xbf16, #tpu.memory_space<vmem>>, vector<1x64x256xbf16>
    %168 = vector.shape_cast %167 : vector<1x64x256xbf16> to vector<64x256xbf16>
    %cst_78 = arith.constant dense<0.000000e+00> : vector<8x256xf32>
    %169 = tpu.matmul %166, %168, %cst_78 {dimension_numbers = #tpu.dot_dimension_numbers<[1], [0], [0], [1], [0, 0, 1, 1], [], []>} : vector<8x64xbf16>, vector<64x256xbf16>, vector<8x256xf32> -> vector<8x256xf32>
    %170 = arith.addf %164, %169 : vector<8x256xf32>
    %171 = vector.extract_strided_slice %145 {offsets = [32, 0], sizes = [8, 64], strides = [1, 1]} : vector<72x64xf32> to vector<8x64xf32>
    %172 = arith.truncf %171 : vector<8x64xf32> to vector<8x64xbf16>
    %c4 = arith.constant 4 : index
    %c0_79 = arith.constant 0 : index
    %c0_80 = arith.constant 0 : index
    %173 = vector.load %arg5[%c4, %c0_79, %c0_80] : memref<9x64x256xbf16, #tpu.memory_space<vmem>>, vector<1x64x256xbf16>
    %174 = vector.shape_cast %173 : vector<1x64x256xbf16> to vector<64x256xbf16>
    %cst_81 = arith.constant dense<0.000000e+00> : vector<8x256xf32>
    %175 = tpu.matmul %172, %174, %cst_81 {dimension_numbers = #tpu.dot_dimension_numbers<[1], [0], [0], [1], [0, 0, 1, 1], [], []>} : vector<8x64xbf16>, vector<64x256xbf16>, vector<8x256xf32> -> vector<8x256xf32>
    %176 = arith.addf %170, %175 : vector<8x256xf32>
    %177 = vector.extract_strided_slice %145 {offsets = [40, 0], sizes = [8, 64], strides = [1, 1]} : vector<72x64xf32> to vector<8x64xf32>
    %178 = arith.truncf %177 : vector<8x64xf32> to vector<8x64xbf16>
    %c5 = arith.constant 5 : index
    %c0_82 = arith.constant 0 : index
    %c0_83 = arith.constant 0 : index
    %179 = vector.load %arg5[%c5, %c0_82, %c0_83] : memref<9x64x256xbf16, #tpu.memory_space<vmem>>, vector<1x64x256xbf16>
    %180 = vector.shape_cast %179 : vector<1x64x256xbf16> to vector<64x256xbf16>
    %cst_84 = arith.constant dense<0.000000e+00> : vector<8x256xf32>
    %181 = tpu.matmul %178, %180, %cst_84 {dimension_numbers = #tpu.dot_dimension_numbers<[1], [0], [0], [1], [0, 0, 1, 1], [], []>} : vector<8x64xbf16>, vector<64x256xbf16>, vector<8x256xf32> -> vector<8x256xf32>
    %182 = arith.addf %176, %181 : vector<8x256xf32>
    %183 = vector.extract_strided_slice %145 {offsets = [48, 0], sizes = [8, 64], strides = [1, 1]} : vector<72x64xf32> to vector<8x64xf32>
    %184 = arith.truncf %183 : vector<8x64xf32> to vector<8x64xbf16>
    %c6 = arith.constant 6 : index
    %c0_85 = arith.constant 0 : index
    %c0_86 = arith.constant 0 : index
    %185 = vector.load %arg5[%c6, %c0_85, %c0_86] : memref<9x64x256xbf16, #tpu.memory_space<vmem>>, vector<1x64x256xbf16>
    %186 = vector.shape_cast %185 : vector<1x64x256xbf16> to vector<64x256xbf16>
    %cst_87 = arith.constant dense<0.000000e+00> : vector<8x256xf32>
    %187 = tpu.matmul %184, %186, %cst_87 {dimension_numbers = #tpu.dot_dimension_numbers<[1], [0], [0], [1], [0, 0, 1, 1], [], []>} : vector<8x64xbf16>, vector<64x256xbf16>, vector<8x256xf32> -> vector<8x256xf32>
    %188 = arith.addf %182, %187 : vector<8x256xf32>
    %189 = vector.extract_strided_slice %145 {offsets = [56, 0], sizes = [8, 64], strides = [1, 1]} : vector<72x64xf32> to vector<8x64xf32>
    %190 = arith.truncf %189 : vector<8x64xf32> to vector<8x64xbf16>
    %c7 = arith.constant 7 : index
    %c0_88 = arith.constant 0 : index
    %c0_89 = arith.constant 0 : index
    %191 = vector.load %arg5[%c7, %c0_88, %c0_89] : memref<9x64x256xbf16, #tpu.memory_space<vmem>>, vector<1x64x256xbf16>
    %192 = vector.shape_cast %191 : vector<1x64x256xbf16> to vector<64x256xbf16>
    %cst_90 = arith.constant dense<0.000000e+00> : vector<8x256xf32>
    %193 = tpu.matmul %190, %192, %cst_90 {dimension_numbers = #tpu.dot_dimension_numbers<[1], [0], [0], [1], [0, 0, 1, 1], [], []>} : vector<8x64xbf16>, vector<64x256xbf16>, vector<8x256xf32> -> vector<8x256xf32>
    %194 = arith.addf %188, %193 : vector<8x256xf32>
    %195 = vector.extract_strided_slice %145 {offsets = [64, 0], sizes = [8, 64], strides = [1, 1]} : vector<72x64xf32> to vector<8x64xf32>
    %196 = arith.truncf %195 : vector<8x64xf32> to vector<8x64xbf16>
    %c8 = arith.constant 8 : index
    %c0_91 = arith.constant 0 : index
    %c0_92 = arith.constant 0 : index
    %197 = vector.load %arg5[%c8, %c0_91, %c0_92] : memref<9x64x256xbf16, #tpu.memory_space<vmem>>, vector<1x64x256xbf16>
    %198 = vector.shape_cast %197 : vector<1x64x256xbf16> to vector<64x256xbf16>
    %cst_93 = arith.constant dense<0.000000e+00> : vector<8x256xf32>
    %199 = tpu.matmul %196, %198, %cst_93 {dimension_numbers = #tpu.dot_dimension_numbers<[1], [0], [0], [1], [0, 0, 1, 1], [], []>} : vector<8x64xbf16>, vector<64x256xbf16>, vector<8x256xf32> -> vector<8x256xf32>
    %200 = arith.addf %194, %199 : vector<8x256xf32>
    %201 = vector.extract_strided_slice %5 {offsets = [0, 0], sizes = [8, 1], strides = [1, 1]} : vector<8x16xf32> to vector<8x1xf32>
    %202 = vector.broadcast %201 : vector<8x1xf32> to vector<8x256xf32>
    %203 = arith.addf %200, %202 : vector<8x256xf32>
    %204 = vector.extract_strided_slice %5 {offsets = [0, 1], sizes = [8, 1], strides = [1, 1]} : vector<8x16xf32> to vector<8x1xf32>
    %205 = vector.extract_strided_slice %5 {offsets = [0, 2], sizes = [8, 1], strides = [1, 1]} : vector<8x16xf32> to vector<8x1xf32>
    %cst_94 = arith.constant dense<0.000000e+00> : vector<8xf32>
    %206 = vector.multi_reduction <add>, %203, %cst_94 [1] : vector<8x256xf32> to vector<8xf32>
    %207 = vector.shape_cast %206 : vector<8xf32> to vector<8x1xf32>
    %cst_95 = arith.constant 2.560000e+02 : f32
    %208 = vector.broadcast %cst_95 : f32 to vector<8x1xf32>
    %209 = arith.divf %207, %208 : vector<8x1xf32>
    %210 = vector.broadcast %209 : vector<8x1xf32> to vector<8x256xf32>
    %211 = arith.subf %203, %210 : vector<8x256xf32>
    %212 = arith.mulf %211, %211 : vector<8x256xf32>
    %cst_96 = arith.constant dense<0.000000e+00> : vector<8xf32>
    %213 = vector.multi_reduction <add>, %212, %cst_96 [1] : vector<8x256xf32> to vector<8xf32>
    %214 = vector.shape_cast %213 : vector<8xf32> to vector<8x1xf32>
    %cst_97 = arith.constant 2.560000e+02 : f32
    %215 = vector.broadcast %cst_97 : f32 to vector<8x1xf32>
    %216 = arith.divf %214, %215 : vector<8x1xf32>
    %217 = vector.broadcast %209 : vector<8x1xf32> to vector<8x256xf32>
    %218 = arith.subf %203, %217 : vector<8x256xf32>
    %cst_98 = arith.constant 9.99999974E-6 : f32
    %219 = vector.broadcast %cst_98 : f32 to vector<8x1xf32>
    %220 = arith.addf %216, %219 : vector<8x1xf32>
    %221 = math.rsqrt %220 : vector<8x1xf32>
    %222 = vector.broadcast %221 : vector<8x1xf32> to vector<8x256xf32>
    %223 = arith.mulf %218, %222 : vector<8x256xf32>
    %224 = vector.broadcast %204 : vector<8x1xf32> to vector<8x256xf32>
    %225 = arith.mulf %223, %224 : vector<8x256xf32>
    %226 = vector.broadcast %205 : vector<8x1xf32> to vector<8x256xf32>
    %227 = arith.addf %225, %226 : vector<8x256xf32>
    %cst_99 = arith.constant 0.000000e+00 : f32
    %228 = vector.broadcast %cst_99 : f32 to vector<8x256xf32>
    %229 = arith.subf %228, %227 : vector<8x256xf32>
    %230 = math.exp %229 : vector<8x256xf32>
    %cst_100 = arith.constant 1.000000e+00 : f32
    %231 = vector.broadcast %cst_100 : f32 to vector<8x256xf32>
    %232 = arith.addf %231, %230 : vector<8x256xf32>
    %233 = tpu.reciprocal %232 : vector<8x256xf32> -> vector<8x256xf32>
    %234 = arith.mulf %227, %233 : vector<8x256xf32>
    %c0_101 = arith.constant 0 : index
    %c0_102 = arith.constant 0 : index
    %235 = vector.load %arg7[%c0_101, %c0_102] : memref<72x8xbf16, #tpu.memory_space<vmem>>, vector<72x8xbf16>
    %236 = arith.truncf %234 : vector<8x256xf32> to vector<8x256xbf16>
    %cst_103 = arith.constant dense<0.000000e+00> : vector<72x256xf32>
    %237 = tpu.matmul %235, %236, %cst_103 {dimension_numbers = #tpu.dot_dimension_numbers<[1], [0], [0], [1], [0, 0, 1, 1], [], []>} : vector<72x8xbf16>, vector<8x256xbf16>, vector<72x256xf32> -> vector<72x256xf32>
    %c0_104 = arith.constant 0 : index
    %c128_105 = arith.constant 128 : index
    %238 = vector.load %arg11[%c0_104, %c128_105] : memref<72x402xf32, #tpu.memory_space<vmem>>, vector<72x256xf32>
    tpu.vector_store %arg11[%c0_104, %c128_105], %237 {strides = array<i32>} : memref<72x402xf32, #tpu.memory_space<vmem>>, vector<72x256xf32>,
    %239 = tpu.iota {dimensions = array<i32: 1>} : vector<8x256xi32>
    %c16_i32 = arith.constant 16 : i32
    %c0_i32_106 = arith.constant 0 : i32
    %240 = arith.cmpi eq, %c16_i32, %c0_i32_106 : i32
    %c1_i32_107 = arith.constant 1 : i32
    %241 = arith.select %240, %c1_i32_107, %c16_i32 : i32
    %242 = vector.broadcast %241 : i32 to vector<8x256xi32>
    %243 = arith.remsi %239, %242 : vector<8x256xi32>
    %c0_i32_108 = arith.constant 0 : i32
    %244 = vector.broadcast %c0_i32_108 : i32 to vector<8x256xi32>
    %245 = arith.cmpi ne, %243, %244 : vector<8x256xi32>
    %c0_i32_109 = arith.constant 0 : i32
    %246 = vector.broadcast %c0_i32_109 : i32 to vector<8x256xi32>
    %247 = arith.cmpi slt, %243, %246 : vector<8x256xi32>
    %c0_i32_110 = arith.constant 0 : i32
    %248 = arith.cmpi slt, %241, %c0_i32_110 : i32
    %249 = vector.broadcast %248 : i1 to vector<8x256xi1>
    %250 = vector.broadcast %249 : vector<8x256xi1> to vector<8x256xi1>
    %251 = arith.xori %247, %250 : vector<8x256xi1>
    %252 = arith.andi %251, %245 : vector<8x256xi1>
    %253 = vector.broadcast %241 : i32 to vector<8x256xi32>
    %254 = arith.addi %243, %253 : vector<8x256xi32>
    %255 = arith.select %252, %254, %243 : vector<8x256xi1>, vector<8x256xi32>
    %c32_111 = arith.constant 32 : index
    %c128_112 = arith.constant 128 : index
    %256 = vector.load %arg11[%c32_111, %c128_112] : memref<72x402xf32, #tpu.memory_space<vmem>>, vector<8x256xf32>
    %c0_113 = arith.constant 0 : index
    %c145 = arith.constant 145 : index
    %257 = vector.load %arg11[%c0_113, %c145] : memref<72x402xf32, #tpu.memory_space<vmem>>, vector<8x256xf32>
    %c14_i32 = arith.constant 14 : i32
    %258 = vector.broadcast %c14_i32 : i32 to vector<8x256xi32>
    %259 = arith.cmpi sle, %255, %258 : vector<8x256xi32>
    %cst_114 = arith.constant 0.000000e+00 : f32
    %260 = vector.broadcast %cst_114 : f32 to vector<8x256xf32>
    %261 = arith.select %259, %257, %260 : vector<8x256xi1>, vector<8x256xf32>
    %262 = arith.addf %256, %261 : vector<8x256xf32>
    %c8_115 = arith.constant 8 : index
    %c144_116 = arith.constant 144 : index
    %263 = vector.load %arg11[%c8_115, %c144_116] : memref<72x402xf32, #tpu.memory_space<vmem>>, vector<8x256xf32>
    %264 = arith.addf %262, %263 : vector<8x256xf32>
    %c16_117 = arith.constant 16 : index
    %c143 = arith.constant 143 : index
    %265 = vector.load %arg11[%c16_117, %c143] : memref<72x402xf32, #tpu.memory_space<vmem>>, vector<8x256xf32>
    %c1_i32_118 = arith.constant 1 : i32
    %266 = vector.broadcast %c1_i32_118 : i32 to vector<8x256xi32>
    %267 = arith.cmpi sge, %255, %266 : vector<8x256xi32>
    %cst_119 = arith.constant 0.000000e+00 : f32
    %268 = vector.broadcast %cst_119 : f32 to vector<8x256xf32>
    %269 = arith.select %267, %265, %268 : vector<8x256xi1>, vector<8x256xf32>
    %270 = arith.addf %264, %269 : vector<8x256xf32>
    %c24 = arith.constant 24 : index
    %c129_120 = arith.constant 129 : index
    %271 = vector.load %arg11[%c24, %c129_120] : memref<72x402xf32, #tpu.memory_space<vmem>>, vector<8x256xf32>
    %c14_i32_121 = arith.constant 14 : i32
    %272 = vector.broadcast %c14_i32_121 : i32 to vector<8x256xi32>
    %273 = arith.cmpi sle, %255, %272 : vector<8x256xi32>
    %cst_122 = arith.constant 0.000000e+00 : f32
    %274 = vector.broadcast %cst_122 : f32 to vector<8x256xf32>
    %275 = arith.select %273, %271, %274 : vector<8x256xi1>, vector<8x256xf32>
    %276 = arith.addf %270, %275 : vector<8x256xf32>
    %c40_123 = arith.constant 40 : index
    %c127_124 = arith.constant 127 : index
    %277 = vector.load %arg11[%c40_123, %c127_124] : memref<72x402xf32, #tpu.memory_space<vmem>>, vector<8x256xf32>
    %c1_i32_125 = arith.constant 1 : i32
    %278 = vector.broadcast %c1_i32_125 : i32 to vector<8x256xi32>
    %279 = arith.cmpi sge, %255, %278 : vector<8x256xi32>
    %cst_126 = arith.constant 0.000000e+00 : f32
    %280 = vector.broadcast %cst_126 : f32 to vector<8x256xf32>
    %281 = arith.select %279, %277, %280 : vector<8x256xi1>, vector<8x256xf32>
    %282 = arith.addf %276, %281 : vector<8x256xf32>
    %c48_127 = arith.constant 48 : index
    %c113 = arith.constant 113 : index
    %283 = vector.load %arg11[%c48_127, %c113] : memref<72x402xf32, #tpu.memory_space<vmem>>, vector<8x256xf32>
    %c14_i32_128 = arith.constant 14 : i32
    %284 = vector.broadcast %c14_i32_128 : i32 to vector<8x256xi32>
    %285 = arith.cmpi sle, %255, %284 : vector<8x256xi32>
    %cst_129 = arith.constant 0.000000e+00 : f32
    %286 = vector.broadcast %cst_129 : f32 to vector<8x256xf32>
    %287 = arith.select %285, %283, %286 : vector<8x256xi1>, vector<8x256xf32>
    %288 = arith.addf %282, %287 : vector<8x256xf32>
    %c56 = arith.constant 56 : index
    %c112_130 = arith.constant 112 : index
    %289 = vector.load %arg11[%c56, %c112_130] : memref<72x402xf32, #tpu.memory_space<vmem>>, vector<8x256xf32>
    %290 = arith.addf %288, %289 : vector<8x256xf32>
    %c64_131 = arith.constant 64 : index
    %c111 = arith.constant 111 : index
    %291 = vector.load %arg11[%c64_131, %c111] : memref<72x402xf32, #tpu.memory_space<vmem>>, vector<8x256xf32>
    %c1_i32_132 = arith.constant 1 : i32
    %292 = vector.broadcast %c1_i32_132 : i32 to vector<8x256xi32>
    %293 = arith.cmpi sge, %255, %292 : vector<8x256xi32>
    %cst_133 = arith.constant 0.000000e+00 : f32
    %294 = vector.broadcast %cst_133 : f32 to vector<8x256xf32>
    %295 = arith.select %293, %291, %294 : vector<8x256xi1>, vector<8x256xf32>
    %296 = arith.addf %290, %295 : vector<8x256xf32>
    %297 = vector.extract_strided_slice %6 {offsets = [0, 0], sizes = [8, 1], strides = [1, 1]} : vector<8x16xf32> to vector<8x1xf32>
    %298 = vector.broadcast %297 : vector<8x1xf32> to vector<8x256xf32>
    %299 = arith.addf %296, %298 : vector<8x256xf32>
    %300 = vector.extract_strided_slice %6 {offsets = [0, 1], sizes = [8, 1], strides = [1, 1]} : vector<8x16xf32> to vector<8x1xf32>
    %301 = vector.extract_strided_slice %6 {offsets = [0, 2], sizes = [8, 1], strides = [1, 1]} : vector<8x16xf32> to vector<8x1xf32>
    %cst_134 = arith.constant dense<0.000000e+00> : vector<8xf32>
    %302 = vector.multi_reduction <add>, %299, %cst_134 [1] : vector<8x256xf32> to vector<8xf32>
    %303 = vector.shape_cast %302 : vector<8xf32> to vector<8x1xf32>
    %cst_135 = arith.constant 2.560000e+02 : f32
    %304 = vector.broadcast %cst_135 : f32 to vector<8x1xf32>
    %305 = arith.divf %303, %304 : vector<8x1xf32>
    %306 = vector.broadcast %305 : vector<8x1xf32> to vector<8x256xf32>
    %307 = arith.subf %299, %306 : vector<8x256xf32>
    %308 = arith.mulf %307, %307 : vector<8x256xf32>
    %cst_136 = arith.constant dense<0.000000e+00> : vector<8xf32>
    %309 = vector.multi_reduction <add>, %308, %cst_136 [1] : vector<8x256xf32> to vector<8xf32>
    %310 = vector.shape_cast %309 : vector<8xf32> to vector<8x1xf32>
    %cst_137 = arith.constant 2.560000e+02 : f32
    %311 = vector.broadcast %cst_137 : f32 to vector<8x1xf32>
    %312 = arith.divf %310, %311 : vector<8x1xf32>
    %313 = vector.broadcast %305 : vector<8x1xf32> to vector<8x256xf32>
    %314 = arith.subf %299, %313 : vector<8x256xf32>
    %cst_138 = arith.constant 9.99999974E-6 : f32
    %315 = vector.broadcast %cst_138 : f32 to vector<8x1xf32>
    %316 = arith.addf %312, %315 : vector<8x1xf32>
    %317 = math.rsqrt %316 : vector<8x1xf32>
    %318 = vector.broadcast %317 : vector<8x1xf32> to vector<8x256xf32>
    %319 = arith.mulf %314, %318 : vector<8x256xf32>
    %320 = vector.broadcast %300 : vector<8x1xf32> to vector<8x256xf32>
    %321 = arith.mulf %319, %320 : vector<8x256xf32>
    %322 = vector.broadcast %301 : vector<8x1xf32> to vector<8x256xf32>
    %323 = arith.addf %321, %322 : vector<8x256xf32>
    %cst_139 = arith.constant 0.000000e+00 : f32
    %324 = vector.broadcast %cst_139 : f32 to vector<8x256xf32>
    %325 = arith.subf %324, %323 : vector<8x256xf32>
    %326 = math.exp %325 : vector<8x256xf32>
    %cst_140 = arith.constant 1.000000e+00 : f32
    %327 = vector.broadcast %cst_140 : f32 to vector<8x256xf32>
    %328 = arith.addf %327, %326 : vector<8x256xf32>
    %329 = tpu.reciprocal %328 : vector<8x256xf32> -> vector<8x256xf32>
    %330 = arith.mulf %323, %329 : vector<8x256xf32>
    %331 = vector.extract_strided_slice %6 {offsets = [0, 3], sizes = [8, 1], strides = [1, 1]} : vector<8x16xf32> to vector<8x1xf32>
    %332 = vector.extract_strided_slice %6 {offsets = [0, 4], sizes = [8, 1], strides = [1, 1]} : vector<8x16xf32> to vector<8x1xf32>
    %333 = vector.broadcast %22 : vector<1x16xf32> to vector<8x16xf32>
    %334 = arith.mulf %2, %333 : vector<8x16xf32>
    %cst_141 = arith.constant dense<0.000000e+00> : vector<8xf32>
    %335 = vector.multi_reduction <add>, %334, %cst_141 [1] : vector<8x16xf32> to vector<8xf32>
    %336 = vector.shape_cast %335 : vector<8xf32> to vector<8x1xf32>
    %337 = arith.addf %336, %331 : vector<8x1xf32>
    %338 = vector.broadcast %22 : vector<1x16xf32> to vector<8x16xf32>
    %339 = arith.mulf %3, %338 : vector<8x16xf32>
    %cst_142 = arith.constant dense<0.000000e+00> : vector<8xf32>
    %340 = vector.multi_reduction <add>, %339, %cst_142 [1] : vector<8x16xf32> to vector<8xf32>
    %341 = vector.shape_cast %340 : vector<8xf32> to vector<8x1xf32>
    %342 = arith.addf %341, %332 : vector<8x1xf32>
    %cst_143 = arith.constant 1.000000e+00 : f32
    %343 = vector.broadcast %cst_143 : f32 to vector<8x1xf32>
    %344 = arith.addf %342, %343 : vector<8x1xf32>
    %345 = vector.broadcast %344 : vector<8x1xf32> to vector<8x256xf32>
    %346 = arith.mulf %330, %345 : vector<8x256xf32>
    %347 = vector.broadcast %337 : vector<8x1xf32> to vector<8x256xf32>
    %348 = arith.addf %346, %347 : vector<8x256xf32>
    %349 = vector.extract_strided_slice %7 {offsets = [0, 0], sizes = [8, 8], strides = [1, 1]} : vector<8x16xf32> to vector<8x8xf32>
    %350 = arith.truncf %349 : vector<8x8xf32> to vector<8x8xbf16>
    %351 = arith.truncf %348 : vector<8x256xf32> to vector<8x256xbf16>
    %cst_144 = arith.constant dense<0.000000e+00> : vector<8x256xf32>
    %352 = tpu.matmul %350, %351, %cst_144 {dimension_numbers = #tpu.dot_dimension_numbers<[1], [0], [0], [1], [0, 0, 1, 1], [], []>} : vector<8x8xbf16>, vector<8x256xbf16>, vector<8x256xf32> -> vector<8x256xf32>
    %353 = vector.extract_strided_slice %7 {offsets = [0, 8], sizes = [8, 1], strides = [1, 1]} : vector<8x16xf32> to vector<8x1xf32>
    %354 = vector.broadcast %353 : vector<8x1xf32> to vector<8x256xf32>
    %355 = arith.addf %352, %354 : vector<8x256xf32>
    %356 = vector.extract_strided_slice %355 {offsets = [0, 0], sizes = [4, 256], strides = [1, 1]} : vector<8x256xf32> to vector<4x256xf32>
    %c0_145 = arith.constant 0 : index
    %c0_146 = arith.constant 0 : index
    %c0_147 = arith.constant 0 : index
    %357 = vector.load %arg9[%c0_145, %c0_146, %c0_147] : memref<1x4x256xf32, #tpu.memory_space<vmem>>, vector<1x4x256xf32>
    %358 = vector.shape_cast %357 : vector<1x4x256xf32> to vector<4x256xf32>
    %359 = vector.shape_cast %356 : vector<4x256xf32> to vector<1x4x256xf32>
    tpu.vector_store %arg9[%c0_145, %c0_146, %c0_147], %359 {strides = array<i32>} : memref<1x4x256xf32, #tpu.memory_space<vmem>>, vector<1x4x256xf32>,
    return
  }
  func.func @transform_0(%arg0: i32) -> (i32, i32, i32) {
    %c0_i32 = arith.constant 0 : i32
    %c0_i32_0 = arith.constant 0 : i32
    %c0_i32_1 = arith.constant 0 : i32
    return %arg0, %c0_i32, %c0_i32_0 : i32, i32, i32
  }
  func.func @transform_1(%arg0: i32) -> (i32, i32, i32) {
    %c0_i32 = arith.constant 0 : i32
    %c0_i32_0 = arith.constant 0 : i32
    %c0_i32_1 = arith.constant 0 : i32
    return %arg0, %c0_i32, %c0_i32_0 : i32, i32, i32
  }
  func.func @transform_2(%arg0: i32) -> (i32, i32, i32) {
    %c0_i32 = arith.constant 0 : i32
    %c0_i32_0 = arith.constant 0 : i32
    %c0_i32_1 = arith.constant 0 : i32
    return %arg0, %c0_i32, %c0_i32_0 : i32, i32, i32
  }
  func.func @transform_3(%arg0: i32) -> (i32, i32, i32) {
    %c0_i32 = arith.constant 0 : i32
    %c0_i32_0 = arith.constant 0 : i32
    %c0_i32_1 = arith.constant 0 : i32
    return %arg0, %c0_i32, %c0_i32_0 : i32, i32, i32
  }
  func.func @transform_4(%arg0: i32) -> (i32, i32, i32) {
    %c0_i32 = arith.constant 0 : i32
    %c0_i32_0 = arith.constant 0 : i32
    %c0_i32_1 = arith.constant 0 : i32
    %c0_i32_2 = arith.constant 0 : i32
    return %c0_i32, %c0_i32_0, %c0_i32_1 : i32, i32, i32
  }
  func.func @transform_5(%arg0: i32) -> (i32, i32) {
    %c0_i32 = arith.constant 0 : i32
    %c0_i32_0 = arith.constant 0 : i32
    %c0_i32_1 = arith.constant 0 : i32
    return %c0_i32, %c0_i32_0 : i32, i32
  }
  func.func @transform_6(%arg0: i32) -> (i32, i32) {
    %c0_i32 = arith.constant 0 : i32
    %c0_i32_0 = arith.constant 0 : i32
    %c0_i32_1 = arith.constant 0 : i32
    return %c0_i32, %c0_i32_0 : i32, i32
  }
  func.func @transform_7(%arg0: i32) -> (i32, i32) {
    %c0_i32 = arith.constant 0 : i32
    %c0_i32_0 = arith.constant 0 : i32
    %c0_i32_1 = arith.constant 0 : i32
    return %c0_i32, %c0_i32_0 : i32, i32
  }
  func.func @transform_8(%arg0: i32) -> (i32, i32, i32) {
    %c0_i32 = arith.constant 0 : i32
    %c0_i32_0 = arith.constant 0 : i32
    %c0_i32_1 = arith.constant 0 : i32
    return %arg0, %c0_i32, %c0_i32_0 : i32, i32, i32
  }
}

</mosaic_0001>

<bundles_post_ra>
// kernel: up_half_forward.1
= control target key start
LH: loop header
LB: loop body
LE: loop exit
PB: predicated region body
PF: predicated region fallthrough
CT: control target
= control target key end

     0   :  { %s3163_s27 = smov 0   ;;  %s3884_s0 = inlined_call_operand.vmem [shape: f32[2,16,64], index: 0, kind: input, shape index: {}]   ;;  %s3885_s1 = inlined_call_operand.vmem [shape: f32[2,16,64], index: 1, kind: input, shape index: {}]   ;;  %s3886_s2 = inlined_call_operand.vmem [shape: f32[2,16,64], index: 2, kind: input, shape index: {}]   ;;  %s3887_s3 = inlined_call_operand.vmem [shape: f32[2,1,16], index: 3, kind: input, shape index: {}]   ;;  %s3888_s4 = inlined_call_operand.vmem [shape: bf16[9,64,256], index: 4, kind: input, shape index: {}]   ;;  %s3889_s5 = inlined_call_operand.vmem [shape: bf16[216,32], index: 5, kind: input, shape index: {}]   ;;  %s3890_s6 = inlined_call_operand.vmem [shape: bf16[72,8], index: 6, kind: input, shape index: {}]   ;;  %s3891_s7 = inlined_call_operand.vmem [shape: f32[88,16], index: 7, kind: input, shape index: {}]   ;;  %s3892_s8 = inlined_call_operand.vmem [shape: f32[2,4,256], index: 8, kind: output, shape index: {}]  }
   0x1 LB: > { %s2569_s28 = sadd.s32 4294967295, %s3094_s27   ;;  %p2573_p0 = scmp.ge.s32.totalorder %s3094_s27, 1  ;;  %s3094_s27 = sphi %s3163_s27, %s18_s27  }
   0x2   : > { %p290_p1 = scmp.lt.s32.totalorder %s3094_s27, 3 }
   0x4   : > { %p291_p2 = pnand %p2573_p0, %p290_p1 }
   0x5   : > { %p337_p3 = scmp.lt.s32.totalorder (!%p291_p2), %s2569_s28, 1  ;;  %v3096_v0 = vmov (!%p291_p2), 0.0   ;;  %vm3097_vm0 = vmmov (!%p291_p2), 0   ;;  %s3098_s30 = smov (!%p291_p2), 1   ;;  %vm400_vm1 = vcmask (!%p291_p2), 605184   ;;  %v3099_v6 = vmov (!%p291_p2), 0  }
   0x6   : > { %294 = sbr.rel (%p291_p2) target bundleno = 2576 (0xa10), region = 52  ;;  %399 = vst [vmem:[#allocation2] sm:$0xff] (!%p291_p2), %v3096_v0  ;;  %2792 = vmatprep.subr.bf16.mxu0 (!%p291_p2), %v3096_v0  ;;  %2796 = vmatprep.mubr.msk.bf16.mxu0 (!%p291_p2), %vm3097_vm0, %v3096_v0  ;;  %401 = vst.msk [vmem:[#allocation2 + $0x8] sm:$0xff] (!%p291_p2), %vm400_vm1, %v3096_v0  ;;  %v2924_v8 = vld [vmem:[%s3889_s5] sm:$0xff] (!%p291_p2)   ;;  %vm531_vm2 = vcmask (!%p291_p2), 261120   ;;  %v3238_v9 = vld [vmem:[%s3891_s7 + $0x30] sm:$0xff] (!%p291_p2) }
   0x7   : > { %2832 = vmatprep.subr.bf16.mxu1 (!%p291_p2), %v3096_v0  ;;  %2836 = vmatprep.mubr.msk.bf16.mxu1 (!%p291_p2), %vm3097_vm0, %v3096_v0  ;;  %403 = vst.msk [vmem:[#allocation2 + $0x18] sm:$0xff] (!%p291_p2), %vm400_vm1, %v3096_v0  ;;  %405 = vst.msk [vmem:[#allocation2 + $0x28] sm:$0xff] (!%p291_p2), %vm400_vm1, %v3096_v0  ;;  %v3243_v10 = vld [vmem:[%s3891_s7 + $0x38] sm:$0xff] (!%p291_p2)  ;;  %v2925_v11 = vld [vmem:[%s3889_s5 + $0x8] sm:$0xff] (!%p291_p2)   ;;  %s3100_s19 = smov (!%p291_p2), 9   ;;  %s3101_s20 = smov (!%p291_p2), 7  }
   0x8   : > { %2889 = vrot.lane.b32.xlu0 (!%p291_p2), %v3096_v0, %s3098_s30  ;;  %2894 = vset.pattern.permute.xlu1 (!%p291_p2), %v3099_v6  ;;  %407 = vst.msk [vmem:[#allocation2 + $0x38] sm:$0xff] (!%p291_p2), %vm400_vm1, %v3096_v0  ;;  %409 = vst.msk [vmem:[#allocation2 + $0x48] sm:$0xff] (!%p291_p2), %vm400_vm1, %v3096_v0  ;;  %v2926_v12 = vld [vmem:[%s3889_s5 + $0x10] sm:$0xff] (!%p291_p2)   ;;  %v2927_v13 = vld [vmem:[%s3889_s5 + $0x18] sm:$0xff] (!%p291_p2)   ;;  %s3102_s21 = smov (!%p291_p2), 8   ;;  %vm664_vm3 = vcmask (!%p291_p2), 523264  }
   0x9   : > { %2893 = vset.pattern.permute.xlu0 (!%p291_p2), %v3099_v6  ;;  %411 = vst.msk [vmem:[#allocation2 + $0x58] sm:$0xff] (!%p291_p2), %vm400_vm1, %v3096_v0  ;;  %413 = vst.msk [vmem:[#allocation2 + $0x68] sm:$0xff] (!%p291_p2), %vm400_vm1, %v3096_v0  ;;  %860 = vperm.xlu1 (!%p291_p2), %2894, %v3243_v10   ;;  %v2928_v14 = vld [vmem:[%s3889_s5 + $0x20] sm:$0xff] (!%p291_p2)   ;;  %v2929_v15 = vld [vmem:[%s3889_s5 + $0x28] sm:$0xff] (!%p291_p2)   ;;  %s3103_s22 = smov (!%p291_p2), 119   ;;  %s3104_s23 = smov (!%p291_p2), 120  }
   0xa   : > { %415 = vst.msk [vmem:[#allocation2 + $0x78] sm:$0xff] (!%p291_p2), %vm400_vm1, %v3096_v0  ;;  %417 = vst.msk [vmem:[#allocation2 + $0x88] sm:$0xff] (!%p291_p2), %vm400_vm1, %v3096_v0  ;;  %v2930_v16 = vld [vmem:[%s3889_s5 + $0x30] sm:$0xff] (!%p291_p2)   ;;  %v2931_v17 = vld [vmem:[%s3889_s5 + $0x38] sm:$0xff] (!%p291_p2)   ;;  %s3105_s24 = smov (!%p291_p2), 121   ;;  %s3106_s25 = smov (!%p291_p2), 127  }
   0xb   : > { %419 = vst.msk [vmem:[#allocation2 + $0x98] sm:$0xff] (!%p291_p2), %vm400_vm1, %v3096_v0  ;;  %421 = vst.msk [vmem:[#allocation2 + $0xa8] sm:$0xff] (!%p291_p2), %vm400_vm1, %v3096_v0  ;;  %v2932_v18 = vld [vmem:[%s3889_s5 + $0x40] sm:$0xff] (!%p291_p2)   ;;  %vm771_vm6 = vcmask (!%p291_p2), 7168   ;;  %vm796_vm7 = vcmask (!%p291_p2), 56320   ;;  %vm821_vm8 = vcmask (!%p291_p2), 64512  }
   0xc   : > { %423 = vst.msk [vmem:[#allocation2 + $0xb8] sm:$0xff] (!%p291_p2), %vm400_vm1, %v3096_v0  ;;  %425 = vst.msk [vmem:[#allocation2 + $0xc8] sm:$0xff] (!%p291_p2), %vm400_vm1, %v3096_v0  ;;  %855 = vperm.xlu0 (!%p291_p2), %2893, %v3238_v9   ;;  %vm844_vm9 = vcmask (!%p291_p2), 72704   ;;  %vm932_vm10 = vcmask (!%p291_p2), 130048   ;;  %vm439_vm11 = vcmask (!%p291_p2), 146432   ;;  %s3111_s17 = smov (!%p291_p2), 111  }
   0xd   : > { %s3906_s28 = smov (!%p337_p3, %s2569_s28), 1  ;;  %427 = vst.msk [vmem:[#allocation2 + $0xd8] sm:$0xff] %vm400_vm1, %v3096_v0  ;;  %429 = vst.msk [vmem:[#allocation2 + $0xe8] sm:$0xff] %vm400_vm1, %v3096_v0  ;;  %2896 = vrot.lane.b32.xlu1 %v3096_v0, %s3101_s20  ;;  %s3112_s18 = smov 112   ;;  %vm2047_vm12 = vcmask 1043456   ;;  %vm2194_vm13 = vcmask 908288  }
   0xe   : > { %s3181_s29 = sshll.u32 %s3906_s28, 4  ;;  %431 = vst.msk [vmem:[#allocation2 + $0xf8] sm:$0xff] %vm400_vm1, %v3096_v0  ;;  %433 = vst.msk [vmem:[#allocation2 + $0x108] sm:$0xff] %vm400_vm1, %v3096_v0  ;;  %s354_s10 = scalar_lea.vmem %s3887_s3, %s3906_s28 }
   0xf   : > { %s341_s11 = scalar_lea.vmem %s3884_s0, %s3181_s29  ;;  %s346_s14 = scalar_lea.vmem %s3885_s1, %s3181_s29  ;;  %435 = vst.msk [vmem:[#allocation2 + $0x118] sm:$0xff] %vm400_vm1, %v3096_v0  ;;  %vm2236_vm1 = vcmask 924672  }
  0x10   : > { %v480_v1 = vld [vmem:[%s341_s11] sm:$0xff]  ;;  %v481_v2 = vld [vmem:[%s341_s11 + $0x8] sm:$0xff]  ;;  %2906 = vrot.lane.b32.xlu0 %v3096_v0, %s3100_s19  ;;  %s351_s16 = scalar_lea.vmem %s3886_s2, %s3181_s29  ;;  %s3115_s15 = smov 16  }
  0x11   : > { %v482_v3 = vld [vmem:[%s346_s14] sm:$0xff]  ;;  %v484_v4 = vpack.c.bf16 %v481_v2, %v480_v1  ;;  %v483_v5 = vld [vmem:[%s346_s14 + $0x8] sm:$0xff]  ;;  %2901 = vrot.lane.b32.xlu1 %v3096_v0, %s3102_s21  ;;  %s2773_s29 = sshll.u32 %s3906_s28, 3 }
  0x12   : > { %v485_v7 = vpack.c.bf16 %v483_v5, %v482_v3 }
  0x13   : > { %2793 = vmatpush3.bf16.msra.mxu0 %v484_v4 }
  0x14   : > { %2794 = vmatprep.subr.bf16.mxu0 %v3096_v0 }
  0x17   : > { %2795 = vmatpush3.bf16.msra.mxu0 %v485_v7 }
  0x1a   : > { %2797 = vmatmul.mubr.msk.bf16.vlgmr.msra.gmra.mrb[0].mxu0 %vm531_vm2, %v2924_v8  ;;  %v3107_v8 = vmov 1  }
  0x1b   : > { %2800 = vmatprep.mubr.msk.bf16.mxu0 %vm3097_vm0, %v3096_v0  ;;  %2911 = vset.pattern.permute.xlu1 %v3107_v8 }
  0x1c   : > { %2910 = vset.pattern.permute.xlu0 %v3107_v8 }
  0x22   : > { %2801 = vmatmul.mubr.msk.bf16.gmra.mrb[4].mxu0 %vm531_vm2, %v2925_v11 }
  0x23   : > { %2804 = vmatprep.mubr.msk.bf16.mxu0 %vm3097_vm0, %v3096_v0 }
  0x2a   : > { %2805 = vmatmul.mubr.msk.bf16.gmra.mrb[8].mxu0 %vm531_vm2, %v2926_v12 }
  0x2b   : > { %2808 = vmatprep.mubr.msk.bf16.mxu0 %vm3097_vm0, %v3096_v0 }
  0x32   : > { %2809 = vmatmul.mubr.msk.bf16.gmra.mrb[12].mxu0 %vm531_vm2, %v2927_v13 }
  0x33   : > { %2812 = vmatprep.mubr.msk.bf16.mxu0 %vm3097_vm0, %v3096_v0 }
  0x3a   : > { %2813 = vmatmul.mubr.msk.bf16.gmra.mrb[16].mxu0 %vm531_vm2, %v2928_v14  ;;  %v3341_v14 = vld [vmem:[%s354_s10] sm:$0x1] }
  0x3b   : > { %2816 = vmatprep.mubr.msk.bf16.mxu0 %vm3097_vm0, %v3096_v0 }
  0x42   : > { %2817 = vmatmul.mubr.msk.bf16.gmra.mrb[20].mxu0 %vm531_vm2, %v2929_v15 }
  0x43   : > { %2820 = vmatprep.mubr.msk.bf16.mxu0 %vm3097_vm0, %v3096_v0 }
  0x4a   : > { %2821 = vmatmul.mubr.msk.bf16.gmra.mrb[24].mxu0 %vm531_vm2, %v2930_v16  ;;  %v474_v16 = vsub.f32 0.0, %v3341_v14 }
  0x4b   : > { %2824 = vmatprep.mubr.msk.bf16.mxu0 %vm3097_vm0, %v3096_v0 }
  0x52   : > { %2825 = vmatmul.mubr.msk.bf16.gmra.mrb[28].mxu0 %vm531_vm2, %v2931_v17 }
  0x53   : > { %2828 = vmatprep.mubr.msk.bf16.mxu0 %vm3097_vm0, %v3096_v0 }
  0x5a   : > { %2829 = vmatmul.mubr.msk.bf16.gmra.mrb[32].mxu0 %vm531_vm2, %v2932_v18 }
  0x5b   : > { %1363 = vmatprep.mubr.bf16.mxu0 %v3099_v6 }
  0x7a   : > { %v2890_v11 = vpop.permute.xlu0 %2889 }
  0x88   : > { %v3333_v12 = vpop.permute.xlu1 %860 }
  0x8b   : > { %v3339_v13 = vpop.permute.xlu0 %855 }
  0x8c   : > { %v2897_v15 = vpop.permute.xlu1 %2896 }
  0x8f   : > { %v3344_v17 = vpop.permute.xlu0 %2906 }
  0x90   : > { %v3346_v18 = vpop.permute.xlu1 %2901 }
  0xed   : > { %v593_v19 = vpop.f32.mrb[0].mxu0 }
  0xee   : > { %665 = vst.msk [vmem:[#allocation2 + $0x8] sm:$0xff] %vm664_vm3, %v593_v19  ;;  %v2798_v20 = vpop.f32.mrb[1].mxu0  ;;  %v475_v19 = vmul.f32 1.442695, %v474_v16  ;;  %v2904_v16 = vunpack.i.h.bf16 %v3346_v18 }
  0xef   : > { %v596_v21 = vpop.f32.mrb[2].mxu0 }
  0xf0   : > { %666 = vst.msk [vmem:[#allocation2 + $0x18] sm:$0xff] %vm664_vm3, %v596_v21  ;;  %v2799_v22 = vpop.f32.mrb[3].mxu0  ;;  %3051 = vpow2.f32 %v475_v19 }
  0xf1   : > { %v683_v22 = vlaneseq }
  0xf5   : > { %v601_v23 = vpop.f32.mrb[4].mxu0  ;;  %v699_v24 = vld [vmem:[#allocation2 + $0x8] sm:$0xff] }
  0xf6   : > { %667 = vst.msk [vmem:[#allocation2 + $0x28] sm:$0xff] %vm664_vm3, %v601_v23  ;;  %704 = vrot.lane.b32.xlu0 %v699_v24, %s3103_s22  ;;  %v2802_v25 = vpop.f32.mrb[5].mxu0  ;;  %v3348_v24 = vand.u32 127, %v683_v22 }
  0xf7   : > { %v604_v26 = vpop.f32.mrb[6].mxu0  ;;  %v700_v28 = vld [vmem:[#allocation2 + $0x18] sm:$0xff] }
  0xf8   : > { %668 = vst.msk [vmem:[#allocation2 + $0x38] sm:$0xff] %vm664_vm3, %v604_v26  ;;  %v2803_v27 = vpop.f32.mrb[7].mxu0 }
  0xfa   : > { %706 = vrot.lane.b32.xlu0 %v700_v28, %s3103_s22  ;;  %v3052_v27 = vpop.eup %3051  ;;  %v689_v28 = vand.u32 7, %v3348_v24 }
  0xfc   : > { %vm3351_vm4 = vcmp.le.s32.totalorder %v689_v28, 6  ;;  %vm3357_vm5 = vcmp.ge.s32.totalorder %v689_v28, 1  ;;  %v2909_v28 = vunpack.i.h.bf16 %v3344_v17 }
  0xfd   : > { %v609_v29 = vpop.f32.mrb[8].mxu0  ;;  %v714_v30 = vld [vmem:[#allocation2 + $0x28] sm:$0xff] }
  0xfe   : > { %669 = vst.msk [vmem:[#allocation2 + $0x48] sm:$0xff] %vm664_vm3, %v609_v29  ;;  %718 = vrot.lane.b32.xlu1 %v714_v30, %s3104_s23  ;;  %v2806_v31 = vpop.f32.mrb[9].mxu0  ;;  %v477_v30 = vadd.f32 1.0, %v3052_v27 }
  0xff   : > { %v612_v32 = vpop.f32.mrb[10].mxu0  ;;  %v715_v34 = vld [vmem:[#allocation2 + $0x38] sm:$0xff] }
 0x100   : > { %670 = vst.msk [vmem:[#allocation2 + $0x58] sm:$0xff] %vm664_vm3, %v612_v32  ;;  %v2807_v33 = vpop.f32.mrb[11].mxu0  ;;  %3053 = vrcp.f32 %v477_v30 }
 0x102   : > { %720 = vrot.lane.b32.xlu1 %v715_v34, %s3104_s23  ;;  %s359_s23 = scalar_lea.vmem %s3892_s8, %s2773_s29 }
 0x105   : > { %v617_v35 = vpop.f32.mrb[12].mxu0  ;;  %v726_v36 = vld [vmem:[#allocation2 + $0x48] sm:$0xff] }
 0x106   : > { %671 = vst.msk [vmem:[#allocation2 + $0x68] sm:$0xff] %vm664_vm3, %v617_v35  ;;  %731 = vrot.lane.b32.xlu0 %v726_v36, %s3105_s24  ;;  %v2810_v37 = vpop.f32.mrb[13].mxu0 }
 0x107   : > { %v620_v38 = vpop.f32.mrb[14].mxu0  ;;  %v727_v39 = vld [vmem:[#allocation2 + $0x58] sm:$0xff] }
 0x108   : > { %672 = vst.msk [vmem:[#allocation2 + $0x78] sm:$0xff] %vm664_vm3, %v620_v38  ;;  %733 = vrot.lane.b32.xlu1 %v727_v39, %s3105_s24  ;;  %v2811_v40 = vpop.f32.mrb[15].mxu0 }
 0x109   : > { %v2891_v40 = vunpack.i.l.bf16 %v2890_v11 }
 0x10d   : > { %v625_v41 = vpop.f32.mrb[16].mxu0  ;;  %v741_v42 = vld [vmem:[#allocation2 + $0x68] sm:$0xff] }
 0x10e   : > { %673 = vst.msk [vmem:[#allocation2 + $0x88] sm:$0xff] %vm664_vm3, %v625_v41  ;;  %745 = vrot.lane.b32.xlu0 %v741_v42, %s3106_s25  ;;  %v2814_v43 = vpop.f32.mrb[17].mxu0  ;;  %v2892_v42 = vunpack.i.h.bf16 %v2890_v11 }
 0x10f   : > { %v628_v44 = vpop.f32.mrb[18].mxu0  ;;  %v742_v45 = vld [vmem:[#allocation2 + $0x78] sm:$0xff] }
 0x110   : > { %674 = vst.msk [vmem:[#allocation2 + $0x98] sm:$0xff] %vm664_vm3, %v628_v44  ;;  %747 = vrot.lane.b32.xlu1 %v742_v45, %s3106_s25  ;;  %v2815_v46 = vpop.f32.mrb[19].mxu0 }
 0x111   : > { %v2898_v46 = vunpack.i.l.bf16 %v2897_v15 }
 0x115   : > { %v633_v47 = vpop.f32.mrb[20].mxu0  ;;  %v697_v37 = vld [vmem:[#allocation2 + $0x88] sm:$0xff] }
 0x116   : > { %675 = vst.msk [vmem:[#allocation2 + $0xa8] sm:$0xff] %vm664_vm3, %v633_v47  ;;  %v2818_v48 = vpop.f32.mrb[21].mxu0 }
 0x117   : > { %v636_v49 = vpop.f32.mrb[22].mxu0  ;;  %v698_v43 = vld [vmem:[#allocation2 + $0x98] sm:$0xff] }
 0x118   : > { %676 = vst.msk [vmem:[#allocation2 + $0xb8] sm:$0xff] %vm664_vm3, %v636_v49  ;;  %v2819_v50 = vpop.f32.mrb[23].mxu0 }
 0x119   : > { %v926_v50 = vshrl.u32 %v683_v22, 7  ;;  %v2908_v22 = vunpack.i.l.bf16 %v3344_v17 }
 0x11d   : > { %v641_v51 = vpop.f32.mrb[24].mxu0  ;;  %v756_v52 = vld [vmem:[#allocation2 + $0xa8] sm:$0xff] }
 0x11e   : > { %677 = vst.msk [vmem:[#allocation2 + $0xc8] sm:$0xff] %vm664_vm3, %v641_v51  ;;  %765 = vrot.lane.b32.xlu1 %v756_v52, %s3098_s30  ;;  %v2822_v53 = vpop.f32.mrb[25].mxu0  ;;  %v2899_v51 = vunpack.i.h.bf16 %v2897_v15 }
 0x11f   : > { %v644_v54 = vpop.f32.mrb[26].mxu0  ;;  %v758_v55 = vld [vmem:[#allocation2 + $0xb8] sm:$0xff] }
 0x120   : > { %678 = vst.msk [vmem:[#allocation2 + $0xd8] sm:$0xff] %vm664_vm3, %v644_v54  ;;  %769 = vrot.lane.b32.xlu0 %v758_v55, %s3098_s30  ;;  %v2823_v56 = vpop.f32.mrb[27].mxu0 }
 0x125   : > { %v649_v57 = vpop.f32.mrb[28].mxu0  ;;  %v781_v58 = vld [vmem:[#allocation2 + $0xc8] sm:$0xff] }
 0x126   : > { %679 = vst.msk [vmem:[#allocation2 + $0xe8] sm:$0xff] %vm664_vm3, %v649_v57  ;;  %790 = vrot.lane.b32.xlu0 %v781_v58, %s3101_s20  ;;  %v2826_v59 = vpop.f32.mrb[29].mxu0 }
 0x127   : > { %v652_v60 = vpop.f32.mrb[30].mxu0  ;;  %v783_v61 = vld [vmem:[#allocation2 + $0xd8] sm:$0xff] }
 0x128   : > { %680 = vst.msk [vmem:[#allocation2 + $0xf8] sm:$0xff] %vm664_vm3, %v652_v60  ;;  %794 = vrot.lane.b32.xlu1 %v783_v61, %s3101_s20  ;;  %v2827_v62 = vpop.f32.mrb[31].mxu0  ;;  %s3114_s20 = smov 15  }
 0x12d   : > { %v657_v63 = vpop.f32.mrb[32].mxu0  ;;  %v806_v0 = vld [vmem:[#allocation2 + $0xe8] sm:$0xff] }
 0x12e   : > { %681 = vst.msk [vmem:[#allocation2 + $0x108] sm:$0xff] %vm664_vm3, %v657_v63  ;;  %815 = vrot.lane.b32.xlu0 %v806_v0, %s3102_s21  ;;  %v2830_v1 = vpop.f32.mrb[33].mxu0 }
 0x12f   : > { %v660_v2 = vpop.f32.mrb[34].mxu0  ;;  %v808_v3 = vld [vmem:[#allocation2 + $0xf8] sm:$0xff]  ;;  %v3054_v1 = vpop.eup %3053 }
 0x130   : > { %682 = vst.msk [vmem:[#allocation2 + $0x118] sm:$0xff] %vm664_vm3, %v660_v2  ;;  %819 = vrot.lane.b32.xlu1 %v808_v3, %s3102_s21  ;;  %v2831_v4 = vpop.f32.mrb[35].mxu0  ;;  %v2903_v2 = vunpack.i.l.bf16 %v3346_v18 }
 0x135   : > { %v829_v5 = vld [vmem:[#allocation2 + $0x108] sm:$0xff] }
 0x136   : > { %838 = vrot.lane.b32.xlu1 %v829_v5, %s3100_s19 }
 0x137   : > { %v831_v7 = vld [vmem:[#allocation2 + $0x118] sm:$0xff] }
 0x138   : > { %842 = vrot.lane.b32.xlu0 %v831_v7, %s3100_s19  ;;  %v927_v7 = vsub.s32 0, %v926_v50  ;;  %s3113_s19 = smov 113  }
 0x168   : > { %v705_v20 = vpop.permute.xlu0 %704 }
 0x169   : > { %v710_v34 = vsel %vm3351_vm4, %v705_v20, 0.0 }
 0x16a   : > { %v712_v41 = vadd.f32 %v710_v34, %v697_v37 }
 0x16c   : > { %v707_v23 = vpop.permute.xlu0 %706 }
 0x16d   : > { %v711_v38 = vsel %vm3351_vm4, %v707_v23, 0.0 }
 0x16e   : > { %v713_v47 = vadd.f32 %v711_v38, %v698_v43  ;;  %v363_v38 = vld [vmem:[%s3891_s7 + $0x10] sm:$0xff] }
 0x170   : > { %v719_v21 = vpop.permute.xlu1 %718 }
 0x171   : > { %v724_v48 = vadd.f32 %v719_v21, %v712_v41  ;;  %v479_v21 = vmul.f32 %v3054_v1, %v3341_v14  ;;  %v364_v14 = vld [vmem:[%s3891_s7 + $0x18] sm:$0xff] }
 0x174   : > { %v721_v25 = vpop.permute.xlu1 %720 }
 0x175   : > { %v725_v55 = vadd.f32 %v721_v25, %v713_v47 }
 0x178   : > { %v732_v26 = vpop.permute.xlu0 %731 }
 0x179   : > { %v737_v44 = vsel %vm3357_vm5, %v732_v26, 0.0 }
 0x17a   : > { %v734_v29 = vpop.permute.xlu1 %733  ;;  %v739_v56 = vadd.f32 %v737_v44, %v724_v48 }
 0x17b   : > { %v738_v52 = vsel %vm3357_vm5, %v734_v29, 0.0 }
 0x17c   : > { %v740_v61 = vadd.f32 %v738_v52, %v725_v55 }
 0x180   : > { %v746_v31 = vpop.permute.xlu0 %745 }
 0x181   : > { %v751_v53 = vsel %vm3351_vm4, %v746_v31, 0.0 }
 0x182   : > { %v748_v33 = vpop.permute.xlu1 %747  ;;  %v753_v62 = vadd.f32 %v751_v53, %v739_v56 }
 0x183   : > { %v752_v59 = vsel %vm3351_vm4, %v748_v33, 0.0  ;;  %v3396_v33 = vrot.slane %v479_v21, %v927_v7  ;;  %v2955_v21 = vld [vmem:[%s3888_s4 + $0xa4] ss:$8 sps:$4 sm:$0xff]  }
 0x184   : > { %v754_v11 = vadd.f32 %v752_v59, %v740_v61 }
 0x185   : > { %v942_v41 = vmul.f32 %v3396_v33, %v364_v14  ;;  %v941_v36 = vmul.f32 %v3396_v33, %v363_v38 }
 0x187   : > { %v943_v48 = vsel %vm932_vm10, %v941_v36, 0.0 }
 0x190   : > { %v766_v39 = vpop.permute.xlu1 %765 }
 0x191   : > { %v772_v49 = vsel %vm771_vm6, %v2891_v40, %v766_v39 }
 0x192   : > { %v770_v35 = vpop.permute.xlu0 %769  ;;  %v776_v60 = vsel %vm3357_vm5, %v772_v49, 0.0 }
 0x193   : > { %v773_v57 = vsel %vm771_vm6, %v2892_v42, %v770_v35  ;;  %v778_v15 = vadd.f32 %v776_v60, %v753_v62  ;;  %v362_v42 = vld [vmem:[%s3891_s7 + $0x8] sm:$0xff] }
 0x194   : > { %v777_v3 = vsel %vm3357_vm5, %v773_v57, 0.0  ;;  %v931_v47 = vmul.f32 %v3396_v33, %v362_v42 }
 0x195   : > { %v779_v23 = vadd.f32 %v777_v3, %v754_v11  ;;  %v3109_v3 = vmov 4  }
 0x198   : > { %v791_v45 = vpop.permute.xlu0 %790 }
 0x199   : > { %v797_v58 = vsel %vm796_vm7, %v2898_v46, %v791_v45  ;;  %v361_v45 = vld [vmem:[%s3891_s7] sm:$0xff]  ;;  %v946_v46 = vsel %vm932_vm10, %v942_v41, 0.0 }
 0x19a   : > { %v795_v54 = vpop.permute.xlu1 %794  ;;  %v801_v4 = vsel %vm3351_vm4, %v797_v58, 0.0  ;;  %v930_v49 = vmul.f32 %v3396_v33, %v361_v45 }
 0x19b   : > { %v798_v63 = vsel %vm796_vm7, %v2899_v51, %v795_v54  ;;  %v803_v25 = vadd.f32 %v801_v4, %v778_v15  ;;  %v3108_v51 = vmov 2   ;;  %v3110_v15 = vmov 3  }
 0x19c   : > { %v802_v19 = vsel %vm3351_vm4, %v798_v63, 0.0  ;;  %v933_v50 = vsel %vm932_vm10, %v930_v49, 0.0 }
 0x19d   : > { %v804_v29 = vadd.f32 %v802_v19, %v779_v23  ;;  %v2938_v19 = vld [vmem:[%s3888_s4 + $0x80] ss:$8 sps:$4 sm:$0xff]  }
 0x1a0   : > { %v816_v0 = vpop.permute.xlu0 %815 }
 0x1a1   : > { %v822_v20 = vsel %vm821_vm8, %v2903_v2, %v816_v0 }
 0x1a2   : > { %v820_v5 = vpop.permute.xlu1 %819  ;;  %v826_v30 = vadd.f32 %v822_v20, %v803_v25  ;;  %v2940_v20 = vld [vmem:[%s3888_s4 + $0x84] ss:$8 sps:$4 sm:$0xff]  }
 0x1a3   : > { %v823_v26 = vsel %vm821_vm8, %v2904_v16, %v820_v5  ;;  %1331 = vmatprep.subr.bf16.mxu0 %v2940_v20  ;;  %v2956_v20 = vld [vmem:[%s3888_s4 + $0x70] ss:$8 sps:$4 sm:$0xff]  }
 0x1a4   : > { %v827_v34 = vadd.f32 %v823_v26, %v804_v29  ;;  %1332 = vmatpush1.bf16.msra.mxu0 %v2938_v19  ;;  %v2958_v19 = vld [vmem:[%s3888_s4 + $0x74] ss:$8 sps:$4 sm:$0xff]  }
 0x1a8   : > { %v839_v27 = vpop.permute.xlu1 %838 }
 0x1a9   : > { %v845_v18 = vsel %vm844_vm9, %v2908_v22, %v839_v27  ;;  %v2953_v22 = vld [vmem:[%s3888_s4 + $0xa0] ss:$8 sps:$4 sm:$0xff]  }
 0x1aa   : > { %v849_v31 = vsel %vm3357_vm5, %v845_v18, 0.0  ;;  %v843_v32 = vpop.permute.xlu0 %842 }
 0x1ab   : > { %v851_v35 = vadd.f32 %v849_v31, %v826_v30  ;;  %v846_v37 = vsel %vm844_vm9, %v2909_v28, %v843_v32 }
 0x1ac   : > { %v850_v17 = vsel %vm3357_vm5, %v846_v37, 0.0  ;;  %vm2298_vm5 = vcmask 121856  }
 0x1ad   : > { %v852_v39 = vadd.f32 %v850_v17, %v827_v34  ;;  %v863_v40 = vadd.f32 %v3339_v13, %v851_v35 }
 0x1af   : > { %v865_v43 = vsel %vm664_vm3, %v863_v40, 0.0  ;;  %v864_v44 = vadd.f32 %v3333_v12, %v852_v39  ;;  %v936_v12 = vsel %vm932_vm10, %v931_v47, 0.0 }
 0x1b0   : > { %866 = vadd.xlane.f32.xlu1 %v865_v43 }
 0x1b1   : > { %v868_v13 = vsel %vm664_vm3, %v864_v44, 0.0 }
 0x1b2   : > { %869 = vadd.xlane.f32.xlu0 %v868_v13 }
 0x1b4   : > { %947 = vadd.xlane.f32.xlu1 %v946_v46 }
 0x1b6   : > { %944 = vadd.xlane.f32.xlu0 %v943_v48 }
 0x1b8   : > { %937 = vadd.xlane.f32.xlu1 %v936_v12 }
 0x1ba   : > { %934 = vadd.xlane.f32.xlu0 %v933_v50 }
 0x1c9   : > { %897 = vperm.xlu1 %2911, %v3243_v10  }
 0x1cd   : > { %2912 = vset.pattern.permute.xlu1 %v3108_v51 }
 0x1ce   : > { %903 = vperm.xlu1 %2912, %v3238_v9  }
 0x23d   : > { %v867_v52 = vpop.xlane.xlu1 %866 }
 0x23e   : > { %v872_v53 = vmul.f32 0.015625, %v867_v52 }
 0x23f   : > { %v870_v54 = vpop.xlane.xlu0 %869 }
 0x240   : > { %v874_v55 = vsub.f32 %v863_v40, %v872_v53  ;;  %v873_v56 = vmul.f32 0.015625, %v870_v54 }
 0x241   : > { %v948_v0 = vpop.xlane.xlu1 %947 }
 0x242   : > { %v875_v57 = vsub.f32 %v864_v44, %v873_v56  ;;  %v876_v58 = vmul.f32 %v874_v55, %v874_v55  ;;  %v950_v2 = vadd.f32 %v948_v0, %v3243_v10  ;;  %v2943_v0 = vld [vmem:[%s3888_s4 + $0x44] ss:$8 sps:$4 sm:$0xff]  }
 0x243   : > { %v945_v62 = vpop.xlane.xlu0 %944 }
 0x244   : > { %v878_v59 = vsel %vm664_vm3, %v876_v58, 0.0  ;;  %v877_v60 = vmul.f32 %v875_v57, %v875_v57  ;;  %v949_v63 = vadd.f32 %v945_v62, %v3238_v9  ;;  %v952_v4 = vadd.f32 1.0, %v950_v2  ;;  %v2941_v2 = vld [vmem:[%s3888_s4 + $0x40] ss:$8 sps:$4 sm:$0xff]  }
 0x245   : > { %879 = vadd.xlane.f32.xlu0 %v878_v59  ;;  %v938_v11 = vpop.xlane.xlu1 %937  ;;  %v977_v59 = vld [vmem:[%s351_s16] sm:$0xff] }
 0x246   : > { %v881_v61 = vsel %vm664_vm3, %v877_v60, 0.0  ;;  %v951_v1 = vadd.f32 1.0, %v949_v63  ;;  %v940_v16 = vadd.f32 %v938_v11, %v3243_v10  ;;  %v978_v60 = vld [vmem:[%s351_s16 + $0x8] sm:$0xff]  ;;  %v3458_v63 = vld [vmem:[#allocation2] sm:$0xff]  ;;  %v2934_v11 = vld [vmem:[%s3889_s5 + $0x50] sm:$0xff]   ;;  %s3116_s16 = smov 17  }
 0x247   : > { %882 = vadd.xlane.f32.xlu1 %v881_v61  ;;  %v935_v5 = vpop.xlane.xlu0 %934  ;;  %v980_v62 = vpack.c.bf16 %v978_v60, %v977_v59  ;;  %v2991_v59 = vld [vmem:[%s3888_s4 + $0xe4] ss:$8 sps:$4 sm:$0xff]   ;;  %440 = vst.msk [vmem:[#allocation3 + $0x18] sm:$0xff] %vm439_vm11, %v3458_v63  ;;  %444 = vst.msk [vmem:[#allocation3 + $0x38] sm:$0xff] %vm439_vm11, %v3458_v63 }
 0x248   : > { %v939_v7 = vadd.f32 %v935_v5, %v3238_v9  ;;  %v2947_v5 = vld [vmem:[%s3888_s4 + $0x50] ss:$8 sps:$4 sm:$0xff]   ;;  %448 = vst.msk [vmem:[#allocation3 + $0x58] sm:$0xff] %vm439_vm11, %v3458_v63  ;;  %452 = vst.msk [vmem:[#allocation3 + $0x78] sm:$0xff] %vm439_vm11, %v3458_v63 }
 0x249   : > { %v898_v23 = vpop.permute.xlu1 %897 }
 0x24d   : > { %v904_v25 = vpop.permute.xlu1 %903 }
 0x258   : > { %907 = vperm.xlu1 %2912, %v3243_v10   ;;  %v2944_v10 = vld [vmem:[%s3888_s4 + $0x90] ss:$8 sps:$4 sm:$0xff]  }
 0x25b   : > { %893 = vperm.xlu0 %2910, %v3238_v9   ;;  %v2946_v9 = vld [vmem:[%s3888_s4 + $0x94] ss:$8 sps:$4 sm:$0xff]  }
 0x25c   : > { %2913 = vset.pattern.permute.xlu1 %v3109_v3  ;;  %1333 = vmatprep.subr.bf16.mxu0 %v2946_v9  ;;  %v2935_v9 = vld [vmem:[%s3889_s5 + $0x58] sm:$0xff]  }
 0x25d   : > { %955 = vperm.xlu1 %2913, %v951_v1   ;;  %1334 = vmatpush1.bf16.msra.mxu0 %v2944_v10  ;;  %v2933_v1 = vld [vmem:[%s3889_s5 + $0x48] sm:$0xff]   ;;  %v2936_v10 = vld [vmem:[%s3889_s5 + $0x60] sm:$0xff]  }
 0x25e   : > { %1335 = vmatprep.subr.bf16.mxu0 %v2955_v21  ;;  %v2937_v21 = vld [vmem:[%s3889_s5 + $0x68] ss:$0 sps:$4 sm:$0xff]  }
 0x261   : > { %960 = vperm.xlu1 %2913, %v952_v4   ;;  %1336 = vmatpush1.bf16.msra.mxu0 %v2953_v22  ;;  %v2949_v4 = vld [vmem:[%s3888_s4 + $0x54] ss:$8 sps:$4 sm:$0xff]   ;;  %v2961_v22 = vld [vmem:[%s3888_s4 + $0x4] ss:$8 sps:$4 sm:$0xff]  }
 0x265   : > { %2914 = vset.pattern.permute.xlu1 %v3110_v15 }
 0x266   : > { %967 = vperm.xlu1 %2914, %v939_v7   ;;  %v2952_v7 = vld [vmem:[%s3888_s4 + $0x64] ss:$8 sps:$4 sm:$0xff]  }
 0x26a   : > { %972 = vperm.xlu1 %2914, %v940_v16   ;;  %v2950_v16 = vld [vmem:[%s3888_s4 + $0x60] ss:$8 sps:$4 sm:$0xff]  }
 0x26e   : > { %2915 = vset.pattern.permute.xlu1 %v3099_v6 }
 0x2d2   : > { %v880_v26 = vpop.xlane.xlu0 %879 }
 0x2d3   : > { %v884_v27 = vmul.f32 0.015625, %v880_v26  ;;  %v2976_v26 = vld [vmem:[%s3888_s4 + $0x104] ss:$8 sps:$4 sm:$0xff]  }
 0x2d4   : > { %v883_v28 = vpop.xlane.xlu1 %882 }
 0x2d5   : > { %v886_v29 = vadd.f32 1e-05, %v884_v27  ;;  %v885_v30 = vmul.f32 0.015625, %v883_v28  ;;  %v3529_v27 = vld [vmem:[%s3891_s7 + $0x40] sm:$0xff] }
 0x2d6   : > { %1952 = vperm.xlu1 %2915, %v3529_v27  }
 0x2d7   : > { %3055 = vrsqrt.f32 %v886_v29  ;;  %v887_v18 = vadd.f32 1e-05, %v885_v30 }
 0x2d8   : > { %v908_v39 = vpop.permute.xlu1 %907 }
 0x2d9   : > { %3057 = vrsqrt.f32 %v887_v18  ;;  %v2959_v18 = vld [vmem:[%s3888_s4] ss:$8 sps:$4 sm:$0xff]  }
 0x2da   : > { %v894_v32 = vpop.permute.xlu0 %893  ;;  %2916 = vset.pattern.permute.xlu1 %v3108_v51 }
 0x2dc   : > { %v956_v13 = vpop.permute.xlu1 %955 }
 0x2e0   : > { %v961_v48 = vpop.permute.xlu1 %960 }
 0x2e1   : > { %v3056_v31 = vpop.eup %3055 }
 0x2e2   : > { %v890_v14 = vmul.f32 %v3056_v31, %v874_v55 }
 0x2e3   : > { %v3058_v34 = vpop.eup %3057 }
 0x2e4   : > { %v891_v35 = vmul.f32 %v3058_v34, %v875_v57  ;;  %v900_v37 = vmul.f32 %v894_v32, %v890_v14  ;;  %v2964_v14 = vld [vmem:[%s3888_s4 + $0x14] ss:$8 sps:$4 sm:$0xff]   ;;  %v2962_v34 = vld [vmem:[%s3888_s4 + $0x10] ss:$8 sps:$4 sm:$0xff]  }
 0x2e5   : > { %v968_v12 = vpop.permute.xlu1 %967 }
 0x2e6   : > { %v901_v17 = vmul.f32 %v898_v23, %v891_v35  ;;  %v910_v38 = vadd.f32 %v904_v25, %v900_v37  ;;  %v2965_v23 = vld [vmem:[%s3888_s4 + $0xb0] ss:$8 sps:$4 sm:$0xff]   ;;  %v2967_v25 = vld [vmem:[%s3888_s4 + $0xb4] ss:$8 sps:$4 sm:$0xff]   ;;  %v2970_v35 = vld [vmem:[%s3888_s4 + $0x24] ss:$8 sps:$4 sm:$0xff]  }
 0x2e7   : > { %1337 = vmatprep.subr.bf16.mxu0 %v2967_v25 }
 0x2e8   : > { %v911_v40 = vadd.f32 %v908_v39, %v901_v17  ;;  %v912_v41 = vsub.f32 0.0, %v910_v38  ;;  %1338 = vmatpush1.bf16.msra.mxu0 %v2965_v23  ;;  %v2974_v17 = vld [vmem:[%s3888_s4 + $0x100] ss:$8 sps:$4 sm:$0xff]  }
 0x2e9   : > { %v973_v56 = vpop.permute.xlu1 %972  ;;  %1523 = vmatprep.subr.bf16.mxu0 %v2976_v26  ;;  %v3001_v23 = vld [vmem:[%s3888_s4 + $0x140] ss:$8 sps:$4 sm:$0xff]  }
 0x2ea   : > { %v913_v42 = vsub.f32 0.0, %v911_v40  ;;  %v914_v43 = vmul.f32 1.442695, %v912_v41  ;;  %v2968_v41 = vld [vmem:[%s3888_s4 + $0x20] ss:$8 sps:$4 sm:$0xff]  }
 0x2ec   : > { %v916_v44 = vmul.f32 1.442695, %v913_v42  ;;  %3059 = vpow2.f32 %v914_v43  ;;  %v2973_v43 = vld [vmem:[%s3888_s4 + $0x34] ss:$8 sps:$4 sm:$0xff]  }
 0x2ee   : > { %3061 = vpow2.f32 %v916_v44 }
 0x2f6   : > { %v3060_v36 = vpop.eup %3059 }
 0x2f7   : > { %v918_v45 = vadd.f32 1.0, %v3060_v36  ;;  %v2980_v36 = vld [vmem:[%s3888_s4 + $0x110] ss:$8 sps:$4 sm:$0xff]  }
 0x2f8   : > { %v3062_v46 = vpop.eup %3061 }
 0x2f9   : > { %v919_v47 = vadd.f32 1.0, %v3062_v46  ;;  %3063 = vrcp.f32 %v918_v45  ;;  %v2988_v45 = vld [vmem:[%s3888_s4 + $0x124] ss:$8 sps:$4 sm:$0xff]  }
 0x2fa   : > { %v2979_v46 = vld [vmem:[%s3888_s4 + $0xc4] ss:$8 sps:$4 sm:$0xff]  }
 0x2fb   : > { %3065 = vrcp.f32 %v919_v47  ;;  %v2986_v47 = vld [vmem:[%s3888_s4 + $0x120] ss:$8 sps:$4 sm:$0xff]  }
 0x303   : > { %v3064_v49 = vpop.eup %3063 }
 0x304   : > { %v922_v50 = vmul.f32 %v3064_v49, %v910_v38  ;;  %v2994_v49 = vld [vmem:[%s3888_s4 + $0x134] ss:$8 sps:$4 sm:$0xff]  }
 0x305   : > { %v3066_v52 = vpop.eup %3065 }
 0x306   : > { %v963_v53 = vmul.f32 %v956_v13, %v922_v50  ;;  %v923_v54 = vmul.f32 %v3066_v52, %v911_v40  ;;  %v2982_v40 = vld [vmem:[%s3888_s4 + $0x114] ss:$8 sps:$4 sm:$0xff]   ;;  %v2971_v13 = vld [vmem:[%s3888_s4 + $0x30] ss:$8 sps:$4 sm:$0xff]   ;;  %v2977_v50 = vld [vmem:[%s3888_s4 + $0xc0] ss:$8 sps:$4 sm:$0xff]  }
 0x308   : > { %v964_v55 = vmul.f32 %v961_v48, %v923_v54  ;;  %v975_v57 = vadd.f32 %v968_v12, %v963_v53  ;;  %v2985_v54 = vld [vmem:[%s3888_s4 + $0xd4] ss:$8 sps:$4 sm:$0xff]  }
 0x30a   : > { %v976_v58 = vadd.f32 %v973_v56, %v964_v55  ;;  %v2992_v56 = vld [vmem:[%s3888_s4 + $0x130] ss:$8 sps:$4 sm:$0xff]  }
 0x30c   : > { %v979_v61 = vpack.c.bf16 %v976_v58, %v975_v57  ;;  %v3000_v57 = vld [vmem:[%s3888_s4 + $0x184] ss:$8 sps:$4 sm:$0xff]   ;;  %v2983_v58 = vld [vmem:[%s3888_s4 + $0xd0] ss:$8 sps:$4 sm:$0xff]  }
 0x30e   : > { %2833 = vmatpush3.bf16.msra.mxu1 %v979_v61  ;;  %v2998_v61 = vld [vmem:[%s3888_s4 + $0x180] ss:$8 sps:$4 sm:$0xff]  }
 0x30f   : > { %2834 = vmatprep.subr.bf16.mxu1 %v3458_v63 }
 0x312   : > { %2835 = vmatpush3.bf16.msra.mxu1 %v980_v62 }
 0x313   : > { %1153 = vmatprep.subr.bf16.mxu1 %v2943_v0  ;;  %v3006_v0 = vld [vmem:[%s3888_s4 + $0x194] ss:$8 sps:$4 sm:$0xff]  }
 0x315   : > { %2837 = vmatmul.mubr.msk.bf16.vlgmr.msra.gmra.mrb[0].mxu1 %vm531_vm2, %v2933_v1 }
 0x316   : > { %2840 = vmatprep.mubr.msk.bf16.mxu1 %vm3097_vm0, %v3458_v63  ;;  %1154 = vmatpush1.bf16.msra.mxu1 %v2941_v2  ;;  %v2989_v2 = vld [vmem:[%s3888_s4 + $0xe0] ss:$8 sps:$4 sm:$0xff]  }
 0x317   : > { %1155 = vmatprep.subr.bf16.mxu1 %v2949_v4 }
 0x31a   : > { %1156 = vmatpush1.bf16.msra.mxu1 %v2947_v5  ;;  %v2997_v5 = vld [vmem:[%s3888_s4 + $0xf4] ss:$8 sps:$4 sm:$0xff]  }
 0x31b   : > { %1157 = vmatprep.subr.bf16.mxu1 %v2952_v7 }
 0x31d   : > { %2841 = vmatmul.mubr.msk.bf16.gmra.mrb[4].mxu1 %vm531_vm2, %v2934_v11  ;;  %v3004_v11 = vld [vmem:[%s3888_s4 + $0x190] ss:$8 sps:$4 sm:$0xff]  }
 0x31e   : > { %2844 = vmatprep.mubr.msk.bf16.mxu1 %vm3097_vm0, %v3458_v63  ;;  %1158 = vmatpush1.bf16.msra.mxu1 %v2950_v16  ;;  %v3012_v16 = vld [vmem:[%s3888_s4 + $0x1a4] ss:$8 sps:$4 sm:$0xff]  }
 0x31f   : > { %1159 = vmatprep.subr.bf16.mxu1 %v2958_v19  ;;  %v2995_v19 = vld [vmem:[%s3888_s4 + $0xf0] ss:$8 sps:$4 sm:$0xff]  }
 0x322   : > { %1160 = vmatpush1.bf16.msra.mxu1 %v2956_v20  ;;  %v3003_v20 = vld [vmem:[%s3888_s4 + $0x144] ss:$8 sps:$4 sm:$0xff]  }
 0x323   : > { %1237 = vmatprep.subr.bf16.mxu1 %v2961_v22 }
 0x325   : > { %2845 = vmatmul.mubr.msk.bf16.gmra.mrb[8].mxu1 %vm531_vm2, %v2935_v9  ;;  %v3010_v9 = vld [vmem:[%s3888_s4 + $0x1a0] ss:$8 sps:$4 sm:$0xff]  }
 0x326   : > { %2848 = vmatprep.mubr.msk.bf16.mxu1 %vm3097_vm0, %v3458_v63 }
 0x32d   : > { %2849 = vmatmul.mubr.msk.bf16.gmra.mrb[12].mxu1 %vm531_vm2, %v2936_v10 }
 0x32e   : > { %2852 = vmatprep.mubr.msk.bf16.mxu1 %vm3097_vm0, %v3458_v63  ;;  %vm2215_vm0 = vcmask 916480  }
 0x335   : > { %2853 = vmatmul.mubr.msk.bf16.gmra.mrb[16].mxu1 %vm531_vm2, %v2937_v21  ;;  %v3018_v21 = vld [vmem:[%s3888_s4 + $0x1b4] ss:$8 sps:$4 sm:$0xff]   ;;  %vm2257_vm2 = vcmask 1039360  }
 0x336   : > { %1185 = vmatprep.mubr.bf16.mxu1 %v3099_v6 }
 0x3e8   : > { %v1053_v28 = vpop.f32.mrb[0].mxu1 }
 0x3e9   : > { %v2838_v29 = vpop.f32.mrb[1].mxu1  ;;  %v1091_v53 = vpack.c.bf16 %v1053_v28, %v1053_v28  ;;  %v3009_v28 = vld [vmem:[%s3888_s4 + $0x154] ss:$8 sps:$4 sm:$0xff]  }
 0x3ea   : > { %v1056_v30 = vpop.f32.mrb[2].mxu1 }
 0x3eb   : > { %v1100_v31 = vpack.c.bf16 %v1056_v30, %v1056_v30  ;;  %v2839_v32 = vpop.f32.mrb[3].mxu1  ;;  %v3016_v30 = vld [vmem:[%s3888_s4 + $0x1b0] ss:$8 sps:$4 sm:$0xff]  }
 0x3ec   : > { %v3015_v32 = vld [vmem:[%s3888_s4 + $0x164] ss:$8 sps:$4 sm:$0xff]  }
 0x3ed   : > { %2626 = vmatmul.mubr.msk.bf16.vlgmr.msra.gmra.mrb[20].mxu1 %vm664_vm3, %v1100_v31  ;;  %v3007_v31 = vld [vmem:[%s3888_s4 + $0x150] ss:$8 sps:$4 sm:$0xff]  }
 0x3ee   : > { %1238 = vmatpush1.bf16.msra.mxu1 %v2959_v18  ;;  %1269 = vmatprep.mubr.bf16.mxu1 %v3099_v6  ;;  %v3024_v18 = vld [vmem:[%s3888_s4 + $0x204] ss:$8 sps:$4 sm:$0xff]  }
 0x3ef   : > { %1239 = vmatprep.subr.bf16.mxu1 %v2964_v14 }
 0x3f0   : > { %v1061_v37 = vpop.f32.mrb[4].mxu1 }
 0x3f1   : > { %v1278_v38 = vpack.c.bf16 %v1061_v37, %v1061_v37  ;;  %v2842_v39 = vpop.f32.mrb[5].mxu1  ;;  %v3013_v37 = vld [vmem:[%s3888_s4 + $0x160] ss:$8 sps:$4 sm:$0xff]  }
 0x3f2   : > { %1240 = vmatpush1.bf16.msra.mxu1 %v2962_v34  ;;  %v3556_v42 = vpop.f32.mrb[6].mxu1  ;;  %v3022_v34 = vld [vmem:[%s3888_s4 + $0x200] ss:$8 sps:$4 sm:$0xff]   ;;  %v3036_v39 = vld [vmem:[%s3888_s4 + $0x224] ss:$8 sps:$4 sm:$0xff]  }
 0x3f3   : > { %1241 = vmatprep.subr.bf16.mxu1 %v2970_v35  ;;  %v2843_v44 = vpop.f32.mrb[7].mxu1  ;;  %2652 = vmatmul.mubr.msk.bf16.vlgmr.msra.gmra.mrb[36].mxu0 %vm664_vm3, %v1278_v38  ;;  %v1374_v26 = vpack.c.bf16 %v3556_v42, %v3556_v42  ;;  %v3030_v35 = vld [vmem:[%s3888_s4 + $0x214] ss:$8 sps:$4 sm:$0xff]   ;;  %v3028_v38 = vld [vmem:[%s3888_s4 + $0x210] ss:$8 sps:$4 sm:$0xff]  }
 0x3f4   : > { %1524 = vmatpush1.bf16.msra.mxu0 %v2974_v17  ;;  %1555 = vmatprep.mubr.bf16.mxu0 %v3099_v6  ;;  %v3021_v17 = vld [vmem:[%s3888_s4 + $0x174] ss:$8 sps:$4 sm:$0xff]   ;;  %v3034_v42 = vld [vmem:[%s3888_s4 + $0x220] ss:$8 sps:$4 sm:$0xff]  }
 0x3f5   : > { %1525 = vmatprep.subr.bf16.mxu0 %v2982_v40  ;;  %v3019_v40 = vld [vmem:[%s3888_s4 + $0x170] ss:$8 sps:$4 sm:$0xff]   ;;  %v3025_v44 = vld [vmem:[%s3888_s4 + $0x1c0] ss:$8 sps:$4 sm:$0xff]  }
 0x3f6   : > { %1242 = vmatpush1.bf16.msra.mxu1 %v2968_v41  ;;  %v3027_v41 = vld [vmem:[%s3888_s4 + $0x1c4] ss:$8 sps:$4 sm:$0xff]  }
 0x3f7   : > { %1243 = vmatprep.subr.bf16.mxu1 %v2973_v43  ;;  %v3042_v43 = vld [vmem:[%s3888_s4 + $0x234] ss:$8 sps:$4 sm:$0xff]  }
 0x3f8   : > { %1526 = vmatpush1.bf16.msra.mxu0 %v2980_v36  ;;  %v1069_v48 = vpop.f32.mrb[8].mxu1 }
 0x3f9   : > { %1527 = vmatprep.subr.bf16.mxu0 %v2988_v45  ;;  %v2846_v12 = vpop.f32.mrb[9].mxu1  ;;  %v1470_v60 = vpack.c.bf16 %v1069_v48, %v1069_v48  ;;  %v3033_v45 = vld [vmem:[%s3888_s4 + $0x1d4] ss:$8 sps:$4 sm:$0xff]  }
 0x3fa   : > { %1244 = vmatpush1.bf16.msra.mxu1 %v2971_v13  ;;  %v3584_v52 = vpop.f32.mrb[10].mxu1  ;;  %v3040_v13 = vld [vmem:[%s3888_s4 + $0x230] ss:$8 sps:$4 sm:$0xff]   ;;  %v3045_v12 = vld [vmem:[%s3888_s4 + $0x1f4] ss:$8 sps:$4 sm:$0xff]  }
 0x3fb   : > { %1427 = vmatprep.subr.bf16.mxu1 %v2979_v46  ;;  %v2847_v55 = vpop.f32.mrb[11].mxu1  ;;  %v1566_v36 = vpack.c.bf16 %v3584_v52, %v3584_v52  ;;  %v3031_v46 = vld [vmem:[%s3888_s4 + $0x1d0] ss:$8 sps:$4 sm:$0xff]  }
 0x3fc   : > { %1528 = vmatpush1.bf16.msra.mxu0 %v2986_v47  ;;  %v3039_v47 = vld [vmem:[%s3888_s4 + $0x1e4] ss:$8 sps:$4 sm:$0xff]  }
 0x3fd   : > { %2635 = vmatmul.mubr.msk.bf16.vlgmr.msra.gmra.mrb[24].mxu1 %vm664_vm3, %v1091_v53  ;;  %1529 = vmatprep.subr.bf16.mxu0 %v2994_v49  ;;  %v3037_v49 = vld [vmem:[%s3888_s4 + $0x1e0] ss:$8 sps:$4 sm:$0xff]  }
 0x3fe   : > { %1428 = vmatpush1.bf16.msra.mxu1 %v2977_v50  ;;  %1459 = vmatprep.mubr.bf16.mxu1 %v3099_v6  ;;  %v3043_v50 = vld [vmem:[%s3888_s4 + $0x1f0] ss:$8 sps:$4 sm:$0xff]  }
 0x3ff   : > { %1429 = vmatprep.subr.bf16.mxu1 %v2985_v54 }
 0x400   : > { %1530 = vmatpush1.bf16.msra.mxu0 %v2992_v56  ;;  %v1077_v62 = vpop.f32.mrb[12].mxu1 }
 0x401   : > { %1715 = vmatprep.subr.bf16.mxu0 %v3000_v57  ;;  %v2850_v1 = vpop.f32.mrb[13].mxu1  ;;  %v1662_v14 = vpack.c.bf16 %v1077_v62, %v1077_v62 }
 0x402   : > { %1430 = vmatpush1.bf16.msra.mxu1 %v2983_v58  ;;  %v3612_v4 = vpop.f32.mrb[14].mxu1 }
 0x403   : > { %1431 = vmatprep.subr.bf16.mxu1 %v2991_v59  ;;  %2686 = vmatmul.mubr.msk.bf16.vlgmr.msra.gmra.mrb[40].mxu0 %vm664_vm3, %v1470_v60  ;;  %v2851_v7 = vpop.f32.mrb[15].mxu1  ;;  %v1758_v52 = vpack.c.bf16 %v3612_v4, %v3612_v4 }
 0x404   : > { %1716 = vmatpush1.bf16.msra.mxu0 %v2998_v61  ;;  %1747 = vmatprep.mubr.bf16.mxu0 %v3099_v6 }
 0x405   : > { %1717 = vmatprep.subr.bf16.mxu0 %v3006_v0 }
 0x406   : > { %1432 = vmatpush1.bf16.msra.mxu1 %v2989_v2 }
 0x407   : > { %1433 = vmatprep.subr.bf16.mxu1 %v2997_v5 }
 0x408   : > { %1718 = vmatpush1.bf16.msra.mxu0 %v3004_v11  ;;  %v3634_v10 = vpop.f32.mrb[16].mxu1 }
 0x409   : > { %1719 = vmatprep.subr.bf16.mxu0 %v3012_v16  ;;  %v2854_v22 = vpop.f32.mrb[17].mxu1  ;;  %v1854_v48 = vpack.c.bf16 %v3634_v10, %v3634_v10 }
 0x40a   : > { %1434 = vmatpush1.bf16.msra.mxu1 %v2995_v19  ;;  %v1088_v25 = vpop.f32.mrb[18].mxu1 }
 0x40b   : > { %1619 = vmatprep.subr.bf16.mxu1 %v3003_v20  ;;  %v2855_v29 = vpop.f32.mrb[19].mxu1 }
 0x40c   : > { %1720 = vmatpush1.bf16.msra.mxu0 %v3010_v9 }
 0x40d   : > { %2669 = vmatmul.mubr.msk.bf16.vlgmr.msra.gmra.mrb[28].mxu1 %vm664_vm3, %v1374_v26  ;;  %1721 = vmatprep.subr.bf16.mxu0 %v3018_v21 }
 0x40e   : > { %1620 = vmatpush1.bf16.msra.mxu1 %v3001_v23  ;;  %1651 = vmatprep.mubr.bf16.mxu1 %v3099_v6 }
 0x40f   : > { %1621 = vmatprep.subr.bf16.mxu1 %v3009_v28 }
 0x410   : > { %1722 = vmatpush1.bf16.msra.mxu0 %v3016_v30 }
 0x411   : > { %1907 = vmatprep.subr.bf16.mxu0 %v3024_v18 }
 0x412   : > { %1622 = vmatpush1.bf16.msra.mxu1 %v3007_v31 }
 0x413   : > { %1623 = vmatprep.subr.bf16.mxu1 %v3015_v32  ;;  %2720 = vmatmul.mubr.msk.bf16.vlgmr.msra.gmra.mrb[44].mxu0 %vm664_vm3, %v1662_v14 }
 0x414   : > { %1908 = vmatpush1.bf16.msra.mxu0 %v3022_v34  ;;  %1939 = vmatprep.mubr.bf16.mxu0 %v3099_v6 }
 0x415   : > { %1909 = vmatprep.subr.bf16.mxu0 %v3030_v35 }
 0x416   : > { %1624 = vmatpush1.bf16.msra.mxu1 %v3013_v37 }
 0x417   : > { %1625 = vmatprep.subr.bf16.mxu1 %v3021_v17 }
 0x418   : > { %1910 = vmatpush1.bf16.msra.mxu0 %v3028_v38 }
 0x419   : > { %1911 = vmatprep.subr.bf16.mxu0 %v3036_v39 }
 0x41a   : > { %1626 = vmatpush1.bf16.msra.mxu1 %v3019_v40 }
 0x41b   : > { %1811 = vmatprep.subr.bf16.mxu1 %v3027_v41 }
 0x41c   : > { %1912 = vmatpush1.bf16.msra.mxu0 %v3034_v42 }
 0x41d   : > { %2703 = vmatmul.mubr.msk.bf16.vlgmr.msra.gmra.mrb[32].mxu1 %vm664_vm3, %v1566_v36  ;;  %1913 = vmatprep.subr.bf16.mxu0 %v3042_v43 }
 0x41e   : > { %1812 = vmatpush1.bf16.msra.mxu1 %v3025_v44  ;;  %1843 = vmatprep.mubr.bf16.mxu1 %v3099_v6 }
 0x41f   : > { %1813 = vmatprep.subr.bf16.mxu1 %v3033_v45 }
 0x420   : > { %1914 = vmatpush1.bf16.msra.mxu0 %v3040_v13 }
 0x422   : > { %1814 = vmatpush1.bf16.msra.mxu1 %v3031_v46 }
 0x423   : > { %1815 = vmatprep.subr.bf16.mxu1 %v3039_v47  ;;  %2754 = vmatmul.mubr.msk.bf16.vlgmr.msra.gmra.mrb[48].mxu0 %vm664_vm3, %v1854_v48  ;;  %v1953_v47 = vpop.permute.xlu1 %1952 }
 0x424   : > { %2086 = vmatprep.mubr.bf16.mxu0 %v3099_v6 }
 0x426   : > { %1816 = vmatpush1.bf16.msra.mxu1 %v3037_v49 }
 0x427   : > { %1817 = vmatprep.subr.bf16.mxu1 %v3045_v12 }
 0x42a   : > { %1818 = vmatpush1.bf16.msra.mxu1 %v3043_v50 }
 0x42d   : > { %2737 = vmatmul.mubr.msk.bf16.vlgmr.msra.gmra.mrb[36].mxu1 %vm664_vm3, %v1758_v52 }
 0x42e   : > { %2096 = vmatprep.mubr.bf16.mxu1 %v3099_v6 }
 0x4c0   : > { %v1187_v53 = vpop.f32.mrb[20].mxu1 }
 0x4c1   : > { %v1189_v54 = vpop.f32.mrb[21].mxu1 }
 0x4c2   : > { %v1191_v55 = vpop.f32.mrb[22].mxu1 }
 0x4c3   : > { %v1192_v56 = vpop.f32.mrb[23].mxu1 }
 0x4c6   : > { %v1365_v57 = vpop.f32.mrb[36].mxu0 }
 0x4c7   : > { %v1367_v58 = vpop.f32.mrb[37].mxu0 }
 0x4c8   : > { %v1369_v59 = vpop.f32.mrb[38].mxu0 }
 0x4c9   : > { %v1370_v60 = vpop.f32.mrb[39].mxu0 }
 0x4d0   : > { %v1271_v61 = vpop.f32.mrb[24].mxu1 }
 0x4d1   : > { %v1272_v62 = vadd.f32 %v1271_v61, %v1187_v53  ;;  %v1273_v0 = vpop.f32.mrb[25].mxu1  ;;  %v2182_v61 = vld [vmem:[#allocation3 + $0x18] sm:$0xff] }
 0x4d2   : > { %v1274_v1 = vadd.f32 %v1273_v0, %v1189_v54  ;;  %v1275_v2 = vpop.f32.mrb[26].mxu1  ;;  %v2247_v0 = vld [vmem:[#allocation3 + $0x78] sm:$0xff] }
 0x4d3   : > { %v1372_v5 = vadd.f32 %v1365_v57, %v1272_v62  ;;  %v1276_v7 = vpop.f32.mrb[27].mxu1  ;;  %v2205_v62 = vld [vmem:[#allocation3 + $0x38] sm:$0xff] }
 0x4d4   : > { %v1373_v4 = vadd.f32 %v1367_v58, %v1274_v1 }
 0x4d6   : > { %v1557_v11 = vpop.f32.mrb[40].mxu0 }
 0x4d7   : > { %v1559_v16 = vpop.f32.mrb[41].mxu0 }
 0x4d8   : > { %v1561_v19 = vpop.f32.mrb[42].mxu0 }
 0x4d9   : > { %v1562_v20 = vpop.f32.mrb[43].mxu0 }
 0x4e0   : > { %v1461_v9 = vpop.f32.mrb[28].mxu1 }
 0x4e1   : > { %v1468_v10 = vadd.f32 %v1461_v9, %v1372_v5  ;;  %v1463_v21 = vpop.f32.mrb[29].mxu1 }
 0x4e2   : > { %v1469_v22 = vadd.f32 %v1463_v21, %v1373_v4  ;;  %v1465_v23 = vpop.f32.mrb[30].mxu1 }
 0x4e3   : > { %v1564_v25 = vadd.f32 %v1557_v11, %v1468_v10  ;;  %v1466_v26 = vpop.f32.mrb[31].mxu1 }
 0x4e4   : > { %v1565_v28 = vadd.f32 %v1559_v16, %v1469_v22 }
 0x4e6   : > { %v1749_v29 = vpop.f32.mrb[44].mxu0 }
 0x4e7   : > { %v1751_v30 = vpop.f32.mrb[45].mxu0 }
 0x4e8   : > { %v1753_v18 = vpop.f32.mrb[46].mxu0 }
 0x4e9   : > { %v1754_v31 = vpop.f32.mrb[47].mxu0 }
 0x4f0   : > { %v1653_v32 = vpop.f32.mrb[32].mxu1 }
 0x4f1   : > { %v1660_v14 = vadd.f32 %v1653_v32, %v1564_v25  ;;  %v1655_v34 = vpop.f32.mrb[33].mxu1 }
 0x4f2   : > { %v1661_v35 = vadd.f32 %v1655_v34, %v1565_v28  ;;  %v1657_v37 = vpop.f32.mrb[34].mxu1 }
 0x4f3   : > { %v1756_v17 = vadd.f32 %v1749_v29, %v1660_v14  ;;  %v1658_v38 = vpop.f32.mrb[35].mxu1 }
 0x4f4   : > { %v1757_v39 = vadd.f32 %v1751_v30, %v1661_v35  ;;  %v3047_v38 = vld [vmem:[%s3890_s6 + $0x8] sm:$0xff]  }
 0x4f6   : > { %v1941_v40 = vpop.f32.mrb[48].mxu0 }
 0x4f7   : > { %v1943_v41 = vpop.f32.mrb[49].mxu0 }
 0x4f8   : > { %v1945_v42 = vpop.f32.mrb[50].mxu0 }
 0x4f9   : > { %v1946_v43 = vpop.f32.mrb[51].mxu0 }
 0x500   : > { %v1845_v44 = vpop.f32.mrb[36].mxu1 }
 0x501   : > { %v1852_v36 = vadd.f32 %v1845_v44, %v1756_v17  ;;  %v1847_v45 = vpop.f32.mrb[37].mxu1  ;;  %v3046_v17 = vld [vmem:[%s3890_s6] sm:$0xff]  }
 0x502   : > { %v1853_v13 = vadd.f32 %v1847_v45, %v1757_v39  ;;  %v1849_v46 = vpop.f32.mrb[38].mxu1  ;;  %v3048_v39 = vld [vmem:[%s3890_s6 + $0x10] sm:$0xff]  }
 0x503   : > { %v1948_v48 = vadd.f32 %v1941_v40, %v1852_v36  ;;  %v1850_v49 = vpop.f32.mrb[39].mxu1  ;;  %v3049_v40 = vld [vmem:[%s3890_s6 + $0x18] sm:$0xff]  }
 0x504   : > { %v1949_v12 = vadd.f32 %v1943_v41, %v1853_v13  ;;  %v3050_v41 = vld [vmem:[%s3890_s6 + $0x20] ss:$0 sps:$4 sm:$0xff]  }
 0x505   : > { %v1955_v50 = vadd.f32 %v1953_v47, %v1948_v48 }
 0x506   : > { %v1956_v52 = vadd.f32 %v1953_v47, %v1949_v12 }
 0x508   : > { %v1957_v53 = vadd.f32 %v1956_v52, %v1955_v50 }
 0x50a   : > { %1958 = vadd.xlane.f32.xlu0 %v1957_v53 }
 0x520   : > { %1975 = vperm.xlu0 %2910, %v3529_v27  }
 0x524   : > { %2917 = vset.pattern.permute.xlu0 %v3099_v6 }
 0x525   : > { %2192 = vrot.lane.b32.xlu0 %v2182_v61, %s3111_s17 }
 0x597   : > { %v1959_v54 = vpop.xlane.xlu0 %1958 }
 0x598   : > { %v1961_v55 = vmul.f32 0.00390625, %v1959_v54 }
 0x59a   : > { %v1962_v56 = vsub.f32 %v1955_v50, %v1961_v55  ;;  %v1963_v57 = vsub.f32 %v1956_v52, %v1961_v55 }
 0x59c   : > { %v1964_v58 = vmul.f32 %v1962_v56, %v1962_v56  ;;  %v1965_v59 = vmul.f32 %v1963_v57, %v1963_v57 }
 0x59e   : > { %v1966_v60 = vadd.f32 %v1965_v59, %v1964_v58  ;;  %v366_v58 = vld [vmem:[%s3891_s7 + $0x28] sm:$0xff] }
 0x59f   : > { %v1976_v16 = vpop.permute.xlu0 %1975  ;;  %v2398_v59 = vmul.f32 %v3396_v33, %v366_v58 }
 0x5a0   : > { %1967 = vadd.xlane.f32.xlu1 %v1966_v60 }
 0x5a1   : > { %v2399_v60 = vsel %vm932_vm10, %v2398_v59, 0.0 }
 0x5b1   : > { %1981 = vperm.xlu1 %2916, %v3529_v27   ;;  %v2224_v27 = vld [vmem:[#allocation3 + $0x58] sm:$0xff] }
 0x5b2   : > { %2234 = vrot.lane.b32.xlu0 %v2224_v27, %s3113_s19  ;;  %v2193_v27 = vpop.permute.xlu0 %2192 }
 0x5b5   : > { %2918 = vset.pattern.permute.xlu1 %v3107_v8  ;;  %v3748_v8 = vld [vmem:[%s3891_s7 + $0x48] sm:$0xff] }
 0x5b6   : > { %2213 = vrot.lane.b32.xlu1 %v2205_v62, %s3112_s18  ;;  %2272 = vrot.lane.b32.xlu0 %v3458_v63, %s3098_s30 }
 0x5ba   : > { %2255 = vrot.lane.b32.xlu1 %v2247_v0, %s3106_s25  ;;  %2348 = vperm.xlu0 %2917, %v3748_v8  }
 0x5be   : > { %2292 = vrot.lane.b32.xlu1 %v3458_v63, %s3114_s20  ;;  %2919 = vset.pattern.permute.xlu0 %v3108_v51 }
 0x5c2   : > { %2313 = vrot.lane.b32.xlu1 %v3458_v63, %s3115_s15 }
 0x5c6   : > { %2331 = vrot.lane.b32.xlu1 %v3458_v63, %s3116_s16 }
 0x62d   : > { %v1968_v1 = vpop.xlane.xlu1 %1967 }
 0x62e   : > { %v1969_v2 = vmul.f32 0.00390625, %v1968_v1  ;;  %v2235_v1 = vpop.permute.xlu0 %2234 }
 0x630   : > { %v1970_v5 = vadd.f32 1e-05, %v1969_v2 }
 0x631   : > { %v1982_v19 = vpop.permute.xlu1 %1981 }
 0x632   : > { %3067 = vrsqrt.f32 %v1970_v5  ;;  %v2273_v5 = vpop.permute.xlu0 %2272 }
 0x635   : > { %v2214_v61 = vpop.permute.xlu1 %2213 }
 0x639   : > { %v2256_v62 = vpop.permute.xlu1 %2255 }
 0x63c   : > { %v3068_v7 = vpop.eup %3067 }
 0x63d   : > { %v1972_v4 = vmul.f32 %v3068_v7, %v1962_v56  ;;  %v1973_v11 = vmul.f32 %v3068_v7, %v1963_v57  ;;  %v2293_v0 = vpop.permute.xlu1 %2292  ;;  %v3808_v7 = vpop.permute.xlu0 %2348 }
 0x63f   : > { %v1978_v20 = vmul.f32 %v1976_v16, %v1972_v4  ;;  %v1979_v9 = vmul.f32 %v1976_v16, %v1973_v11  ;;  %v2153_v11 = vadd.s32 128, %v3348_v24 }
 0x641   : > { %v1984_v10 = vadd.f32 %v1982_v19, %v1978_v20  ;;  %v1985_v21 = vadd.f32 %v1982_v19, %v1979_v9  ;;  %v3806_v2 = vpop.permute.xlu1 %2313  ;;  %v2158_v19 = vand.u32 15, %v3348_v24  ;;  %v2165_v9 = vand.u32 15, %v2153_v11 }
 0x643   : > { %v1986_v22 = vsub.f32 0.0, %v1984_v10  ;;  %v1987_v23 = vsub.f32 0.0, %v1985_v21  ;;  %vm3814_vm14 = vcmp.le.s32.totalorder %v2158_v19, 14  ;;  %vm3818_vm15 = vcmp.le.s32.totalorder %v2165_v9, 14 }
 0x644   : > { %vm3826_vm3 = vcmp.ge.s32.totalorder %v2158_v19, 1  ;;  %vm3830_vm4 = vcmp.ge.s32.totalorder %v2165_v9, 1 }
 0x645   : > { %v1988_v25 = vmul.f32 1.442695, %v1986_v22  ;;  %v1990_v26 = vmul.f32 1.442695, %v1987_v23  ;;  %v3810_v4 = vpop.permute.xlu1 %2331 }
 0x647   : > { %3069 = vpow2.f32 %v1988_v25 }
 0x648   : > { %3071 = vpow2.f32 %v1990_v26 }
 0x651   : > { %v3070_v51 = vpop.eup %3069 }
 0x652   : > { %v3072_v28 = vpop.eup %3071  ;;  %v1992_v29 = vadd.f32 1.0, %v3070_v51 }
 0x653   : > { %v1993_v30 = vadd.f32 1.0, %v3072_v28 }
 0x654   : > { %3073 = vrcp.f32 %v1992_v29 }
 0x655   : > { %3075 = vrcp.f32 %v1993_v30 }
 0x65e   : > { %v3074_v18 = vpop.eup %3073 }
 0x65f   : > { %v3076_v31 = vpop.eup %3075  ;;  %v1996_v32 = vmul.f32 %v3074_v18, %v1984_v10 }
 0x660   : > { %v1997_v14 = vmul.f32 %v3076_v31, %v1985_v21 }
 0x661   : > { %v2007_v34 = vpack.c.bf16 %v1996_v32, %v1996_v32 }
 0x662   : > { %v2008_v35 = vpack.c.bf16 %v1997_v14, %v1997_v14 }
 0x663   : > { %v2049_v37 = vsel %vm2047_vm12, %v2007_v34, 0 }
 0x664   : > { %2760 = vmatprep.subr.msk.bf16.mxu0 %vm2047_vm12, %v2008_v35  ;;  %2856 = vmatprep.subr.msk.bf16.mxu1 %vm2047_vm12, %v2008_v35 }
 0x665   : > { %2055 = vmatpush1.bf16.msra.mxu0 %v2049_v37  ;;  %2857 = vmatpush1.bf16.msra.mxu1 %v2049_v37 }
 0x668   : > { %2761 = vmatmul.mubr.msk.bf16.vlgmr.msra.gmra.mrb[52].mxu0 %vm821_vm8, %v3046_v17  ;;  %2762 = vmatmul.mubr.msk.bf16.vlgmr.msra.gmra.mrb[40].mxu1 %vm821_vm8, %v3047_v38  ;;  %v3117_v17 = vmov 8  }
 0x669   : > { %2106 = vmatprep.mubr.bf16.mxu1 %v3099_v6  ;;  %2467 = vmatprep.mubr.bf16.mxu0 %v3099_v6 }
 0x670   : > { %2763 = vmatmul.mubr.msk.bf16.gmra.mrb[44].mxu1 %vm821_vm8, %v3048_v39 }
 0x671   : > { %2116 = vmatprep.mubr.bf16.mxu1 %v3099_v6 }
 0x678   : > { %2764 = vmatmul.mubr.msk.bf16.gmra.mrb[48].mxu1 %vm821_vm8, %v3049_v40 }
 0x679   : > { %2126 = vmatprep.mubr.bf16.mxu1 %v3099_v6 }
 0x680   : > { %2765 = vmatmul.mubr.msk.bf16.gmra.mrb[52].mxu1 %vm821_vm8, %v3050_v41 }
 0x73b   : > { %v2088_v42 = vpop.f32.mrb[52].mxu0  ;;  %v2098_v43 = vpop.f32.mrb[40].mxu1 }
 0x73c   : > { %v2090_v44 = vpop.f32.mrb[53].mxu0  ;;  %v2100_v36 = vpop.f32.mrb[41].mxu1  ;;  %2188 = vrot.lane.b32.xlu0 %v2088_v42, %s3111_s17 }
 0x73d   : > { %v2092_v6 = vpop.f32.mrb[54].mxu0  ;;  %v2102_v45 = vpop.f32.mrb[42].mxu1  ;;  %2190 = vrot.lane.b32.xlu1 %v2090_v44, %s3111_s17 }
 0x73e   : > { %v2094_v13 = vpop.f32.mrb[55].mxu0  ;;  %v2104_v46 = vpop.f32.mrb[43].mxu1 }
 0x740   : > { %2230 = vrot.lane.b32.xlu0 %v2098_v43, %s3113_s19 }
 0x741   : > { %2232 = vrot.lane.b32.xlu1 %v2100_v36, %s3113_s19 }
 0x743   : > { %v2108_v47 = vpop.f32.mrb[44].mxu1 }
 0x744   : > { %v2110_v48 = vpop.f32.mrb[45].mxu1  ;;  %2211 = vrot.lane.b32.xlu0 %v2094_v13, %s3112_s18 }
 0x745   : > { %v2112_v63 = vpop.f32.mrb[46].mxu1  ;;  %2209 = vrot.lane.b32.xlu1 %v2092_v6, %s3112_s18 }
 0x746   : > { %v2114_v49 = vpop.f32.mrb[47].mxu1 }
 0x748   : > { %2253 = vrot.lane.b32.xlu0 %v2104_v46, %s3106_s25 }
 0x749   : > { %2251 = vrot.lane.b32.xlu1 %v2102_v45, %s3106_s25 }
 0x74b   : > { %v2118_v12 = vpop.f32.mrb[48].mxu1 }
 0x74c   : > { %v2120_v50 = vpop.f32.mrb[49].mxu1  ;;  %2276 = vrot.lane.b32.xlu0 %v2114_v49, %s3098_s30 }
 0x74d   : > { %v2122_v52 = vpop.f32.mrb[50].mxu1  ;;  %2274 = vrot.lane.b32.xlu1 %v2112_v63, %s3098_s30 }
 0x74e   : > { %v2124_v53 = vpop.f32.mrb[51].mxu1 }
 0x750   : > { %2294 = vrot.lane.b32.xlu0 %v2118_v12, %s3114_s20 }
 0x751   : > { %2296 = vrot.lane.b32.xlu1 %v2120_v50, %s3114_s20 }
 0x753   : > { %v2128_v54 = vpop.f32.mrb[52].mxu1 }
 0x754   : > { %v2130_v55 = vpop.f32.mrb[53].mxu1  ;;  %2317 = vrot.lane.b32.xlu0 %v2124_v53, %s3115_s15 }
 0x755   : > { %v2132_v56 = vpop.f32.mrb[54].mxu1  ;;  %2315 = vrot.lane.b32.xlu1 %v2122_v52, %s3115_s15 }
 0x756   : > { %v2133_v57 = vpop.f32.mrb[55].mxu1 }
 0x758   : > { %2333 = vrot.lane.b32.xlu0 %v2128_v54, %s3116_s16 }
 0x759   : > { %2335 = vrot.lane.b32.xlu1 %v2130_v55, %s3116_s16 }
 0x77d   : > { %2400 = vadd.xlane.f32.xlu1 %v2399_v60 }
 0x78e   : > { %2370 = vperm.xlu1 %2918, %v3748_v8  }
 0x792   : > { %2920 = vset.pattern.permute.xlu1 %v3109_v3 }
 0x7ae   : > { %v2189_v16 = vpop.permute.xlu0 %2188 }
 0x7af   : > { %v2191_v20 = vpop.permute.xlu1 %2190 }
 0x7b0   : > { %v2195_v21 = vsel %vm2194_vm13, %v2189_v16, %v2191_v20  ;;  %v2196_v25 = vsel %vm2194_vm13, %v2191_v20, %v2193_v27 }
 0x7b1   : > { %v2199_v26 = vsel %vm3814_vm14, %v2195_v21, 0.0  ;;  %v2200_v51 = vsel %vm3818_vm15, %v2196_v25, 0.0 }
 0x7b2   : > { %v2231_v3 = vpop.permute.xlu0 %2230  ;;  %v2201_v30 = vadd.f32 %v2199_v26, %v2108_v47  ;;  %v2202_v31 = vadd.f32 %v2200_v51, %v2110_v48 }
 0x7b3   : > { %v2233_v22 = vpop.permute.xlu1 %2232 }
 0x7b4   : > { %v2237_v34 = vsel %vm2236_vm1, %v2231_v3, %v2233_v22  ;;  %v2238_v38 = vsel %vm2236_vm1, %v2233_v22, %v2235_v1 }
 0x7b5   : > { %v2241_v41 = vsel %vm3826_vm3, %v2237_v34, 0.0  ;;  %v2242_v44 = vsel %vm3830_vm4, %v2238_v38, 0.0 }
 0x7b6   : > { %v2212_v24 = vpop.permute.xlu0 %2211 }
 0x7b7   : > { %v2210_v28 = vpop.permute.xlu1 %2209  ;;  %v2217_v18 = vsel %vm2215_vm0, %v2212_v24, %v2214_v61 }
 0x7b8   : > { %v2216_v29 = vsel %vm2215_vm0, %v2210_v28, %v2212_v24  ;;  %v2221_v39 = vadd.f32 %v2217_v18, %v2202_v31 }
 0x7b9   : > { %v2220_v35 = vadd.f32 %v2216_v29, %v2201_v30 }
 0x7ba   : > { %v2254_v32 = vpop.permute.xlu0 %2253  ;;  %v2244_v45 = vadd.f32 %v2242_v44, %v2221_v39 }
 0x7bb   : > { %v2252_v37 = vpop.permute.xlu1 %2251  ;;  %v2259_v42 = vsel %vm2257_vm2, %v2254_v32, %v2256_v62  ;;  %v2243_v36 = vadd.f32 %v2241_v41, %v2220_v35 }
 0x7bc   : > { %v2258_v40 = vsel %vm2257_vm2, %v2252_v37, %v2254_v32  ;;  %v2263_v48 = vsel %vm3818_vm15, %v2259_v42, 0.0  ;;  %v371_v37 = vld [vmem:[%s3891_s7 + $0x50] sm:$0xff] }
 0x7bd   : > { %v2262_v13 = vsel %vm3814_vm14, %v2258_v40, 0.0  ;;  %v2265_v54 = vadd.f32 %v2263_v48, %v2244_v45 }
 0x7be   : > { %v2277_v43 = vpop.permute.xlu0 %2276  ;;  %v2264_v12 = vadd.f32 %v2262_v13, %v2243_v36 }
 0x7bf   : > { %v2275_v6 = vpop.permute.xlu1 %2274 }
 0x7c0   : > { %v2278_v46 = vsel %vm771_vm6, %v2273_v5, %v2275_v6  ;;  %v2279_v47 = vsel %vm771_vm6, %v2275_v6, %v2277_v43  ;;  %vm2337_vm6 = vcmask 138240  }
 0x7c1   : > { %v2282_v63 = vsel %vm3826_vm3, %v2278_v46, 0.0  ;;  %v2283_v50 = vsel %vm3830_vm4, %v2279_v47, 0.0 }
 0x7c2   : > { %v2295_v49 = vpop.permute.xlu0 %2294  ;;  %v2284_v56 = vadd.f32 %v2282_v63, %v2264_v12  ;;  %v2285_v58 = vadd.f32 %v2283_v50, %v2265_v54 }
 0x7c3   : > { %v2299_v52 = vsel %vm2298_vm5, %v2293_v0, %v2295_v49  ;;  %v2297_v53 = vpop.permute.xlu1 %2296 }
 0x7c4   : > { %v2300_v55 = vsel %vm2298_vm5, %v2295_v49, %v2297_v53  ;;  %v2303_v59 = vsel %vm3814_vm14, %v2299_v52, 0.0 }
 0x7c5   : > { %v2304_v57 = vsel %vm3818_vm15, %v2300_v55, 0.0  ;;  %v2305_v1 = vadd.f32 %v2303_v59, %v2284_v56 }
 0x7c6   : > { %v2318_v60 = vpop.permute.xlu0 %2317  ;;  %v2306_v62 = vadd.f32 %v2304_v57, %v2285_v58 }
 0x7c7   : > { %v2316_v61 = vpop.permute.xlu1 %2315 }
 0x7c8   : > { %v2319_v27 = vsel %vm932_vm10, %v3806_v2, %v2316_v61  ;;  %v2320_v0 = vsel %vm932_vm10, %v2316_v61, %v2318_v60  ;;  %v365_v2 = vld [vmem:[%s3891_s7 + $0x20] sm:$0xff] }
 0x7c9   : > { %v2323_v11 = vadd.f32 %v2319_v27, %v2305_v1  ;;  %v2324_v20 = vadd.f32 %v2320_v0, %v2306_v62  ;;  %v2418_v0 = vpack.c.bf16 %v371_v37, %v371_v37 }
 0x7ca   : > { %v2334_v5 = vpop.permute.xlu0 %2333 }
 0x7cb   : > { %v2338_v16 = vsel %vm2337_vm6, %v3810_v4, %v2334_v5  ;;  %v2336_v19 = vpop.permute.xlu1 %2335  ;;  %v2393_v4 = vmul.f32 %v3396_v33, %v365_v2 }
 0x7cc   : > { %v2342_v9 = vsel %vm3826_vm3, %v2338_v16, 0.0  ;;  %v2339_v3 = vsel %vm2337_vm6, %v2334_v5, %v2336_v19 }
 0x7cd   : > { %v2344_v10 = vadd.f32 %v2342_v9, %v2323_v11  ;;  %v2343_v21 = vsel %vm3830_vm4, %v2339_v3, 0.0  ;;  %v2394_v24 = vsel %vm932_vm10, %v2393_v4, 0.0 }
 0x7ce   : > { %v2345_v22 = vadd.f32 %v2343_v21, %v2324_v20 }
 0x7cf   : > { %v2351_v23 = vadd.f32 %v3808_v7, %v2344_v10 }
 0x7d0   : > { %v2352_v25 = vadd.f32 %v3808_v7, %v2345_v22 }
 0x7d2   : > { %v2353_v26 = vadd.f32 %v2352_v25, %v2351_v23 }
 0x7d4   : > { %2354 = vadd.xlane.f32.xlu0 %v2353_v26 }
 0x7d8   : > { %2395 = vadd.xlane.f32.xlu0 %v2394_v24 }
 0x80a   : > { %v2401_v51 = vpop.xlane.xlu1 %2400 }
 0x80b   : > { %v2402_v28 = vadd.f32 %v2401_v51, %v3748_v8 }
 0x80d   : > { %v2403_v29 = vadd.f32 1.0, %v2402_v28 }
 0x80e   : > { %v2371_v41 = vpop.permute.xlu1 %2370 }
 0x80f   : > { %2406 = vperm.xlu1 %2920, %v2403_v29  }
 0x813   : > { %2921 = vset.pattern.permute.xlu1 %v3110_v15 }
 0x861   : > { %v2355_v30 = vpop.xlane.xlu0 %2354 }
 0x862   : > { %v2356_v18 = vmul.f32 0.00390625, %v2355_v30 }
 0x864   : > { %v2357_v31 = vsub.f32 %v2351_v23, %v2356_v18  ;;  %v2358_v32 = vsub.f32 %v2352_v25, %v2356_v18 }
 0x865   : > { %v2396_v14 = vpop.xlane.xlu0 %2395 }
 0x866   : > { %v2359_v7 = vmul.f32 %v2357_v31, %v2357_v31  ;;  %v2360_v34 = vmul.f32 %v2358_v32, %v2358_v32  ;;  %v2397_v33 = vadd.f32 %v2396_v14, %v3748_v8 }
 0x868   : > { %v2361_v35 = vadd.f32 %v2360_v34, %v2359_v7  ;;  %2413 = vperm.xlu1 %2921, %v2397_v33  }
 0x86a   : > { %2362 = vadd.xlane.f32.xlu0 %v2361_v35 }
 0x86c   : > { %2922 = vset.pattern.permute.xlu1 %v3117_v17 }
 0x86d   : > { %2423 = vperm.xlu1 %2922, %v371_v37  }
 0x880   : > { %2376 = vperm.xlu0 %2919, %v3748_v8  }
 0x884   : > { %2923 = vset.pattern.permute.xlu0 %v3117_v17 }
 0x88e   : > { %v2407_v52 = vpop.permute.xlu1 %2406 }
 0x8e7   : > { %v2414_v57 = vpop.permute.xlu1 %2413 }
 0x8ec   : > { %v2424_v5 = vpop.permute.xlu1 %2423 }
 0x8f7   : > { %v2363_v15 = vpop.xlane.xlu0 %2362 }
 0x8f8   : > { %v2364_v38 = vmul.f32 0.00390625, %v2363_v15 }
 0x8fa   : > { %v2365_v39 = vadd.f32 1e-05, %v2364_v38 }
 0x8fc   : > { %3077 = vrsqrt.f32 %v2365_v39 }
 0x8ff   : > { %v2377_v44 = vpop.permute.xlu0 %2376 }
 0x906   : > { %v3078_v40 = vpop.eup %3077 }
 0x907   : > { %v2367_v42 = vmul.f32 %v3078_v40, %v2357_v31  ;;  %v2368_v43 = vmul.f32 %v3078_v40, %v2358_v32 }
 0x909   : > { %v2373_v36 = vmul.f32 %v2371_v41, %v2367_v42  ;;  %v2374_v6 = vmul.f32 %v2371_v41, %v2368_v43 }
 0x90b   : > { %v2379_v8 = vadd.f32 %v2377_v44, %v2373_v36  ;;  %v2380_v45 = vadd.f32 %v2377_v44, %v2374_v6 }
 0x90d   : > { %v2381_v13 = vsub.f32 0.0, %v2379_v8  ;;  %v2382_v46 = vsub.f32 0.0, %v2380_v45 }
 0x90f   : > { %v2383_v47 = vmul.f32 1.442695, %v2381_v13  ;;  %v2385_v48 = vmul.f32 1.442695, %v2382_v46 }
 0x911   : > { %3079 = vpow2.f32 %v2383_v47 }
 0x912   : > { %3081 = vpow2.f32 %v2385_v48 }
 0x91b   : > { %v3080_v63 = vpop.eup %3079 }
 0x91c   : > { %v3082_v49 = vpop.eup %3081  ;;  %v2387_v12 = vadd.f32 1.0, %v3080_v63 }
 0x91d   : > { %v2388_v50 = vadd.f32 1.0, %v3082_v49 }
 0x91e   : > { %3083 = vrcp.f32 %v2387_v12 }
 0x91f   : > { %3085 = vrcp.f32 %v2388_v50 }
 0x928   : > { %v3084_v53 = vpop.eup %3083 }
 0x929   : > { %v3086_v54 = vpop.eup %3085  ;;  %v2391_v55 = vmul.f32 %v3084_v53, %v2379_v8 }
 0x92a   : > { %v2392_v56 = vmul.f32 %v3086_v54, %v2380_v45 }
 0x92b   : > { %v2409_v58 = vmul.f32 %v2407_v52, %v2391_v55 }
 0x92c   : > { %v2410_v59 = vmul.f32 %v2407_v52, %v2392_v56 }
 0x92d   : > { %v2416_v60 = vadd.f32 %v2414_v57, %v2409_v58 }
 0x92e   : > { %v2417_v61 = vadd.f32 %v2414_v57, %v2410_v59 }
 0x92f   : > { %v2419_v62 = vpack.c.bf16 %v2416_v60, %v2416_v60 }
 0x930   : > { %v2420_v27 = vpack.c.bf16 %v2417_v61, %v2417_v61 }
 0x931   : > { %v2430_v1 = vsel %vm2047_vm12, %v2419_v62, 0 }
 0x932   : > { %2766 = vmatprep.subr.msk.bf16.mxu0 %vm2047_vm12, %v2420_v27 }
 0x933   : > { %2436 = vmatpush1.bf16.msra.mxu0 %v2430_v1 }
 0x936   : > { %2767 = vmatmul.mubr.msk.bf16.vlgmr.msra.gmra.mrb[56].mxu0 %vm821_vm8, %v2418_v0 }
 0xa09   : > { %v2469_v11 = vpop.f32.mrb[56].mxu0 }
 0xa0a   : > { %v2471_v16 = vpop.f32.mrb[57].mxu0  ;;  %v2470_v19 = vadd.f32 %v2469_v11, %v2424_v5 }
 0xa0b   : > { %v2473_v20 = vpop.f32.mrb[58].mxu0  ;;  %v2472_v9 = vadd.f32 %v2471_v16, %v2424_v5 }
 0xa0c   : > { %v2474_v3 = vpop.f32.mrb[59].mxu0 }
 0xa0d   : > { %v2478_v10 = vcombine.low %v2470_v19, %v2472_v9 }
 0xa0f   : > { %2480 = vst [vmem:[%s359_s23] sm:$0xff] %v2478_v10 }
 0xa10 PF: > { %s18_s27 = sadd.s32 1, %s3094_s27  }
 0xa11   : > { %p15_p4 = scmp.ge.s32.totalorder %s18_s27, 4  }
 0xa13   :  { %17 = sbr.rel (!%p15_p4) target bundleno = 1 (0x1), region = 99 }

</bundles_post_ra>
